<compile_context>
chip_gen: v7x
topology: tpu7x:2x2x1
jax: 0.10.0
libtpu: 0.0.40
codegen_flags: <defaults>
</compile_context>

<pallas_src>
import jax
import jax.numpy as jnp
from jax.experimental import pallas as pl
from jax.experimental.pallas import tpu as pltpu

COUPLE_SIZE = 1536
HIDDEN1 = 512
HIDDEN2 = 256
N_LABELS = 4
N_PAD = 128  # last layer padded to one full lane width for dense stores


def _round_up(x, m):
    return (x + m - 1) // m * m


def _mlp_kernel(x_ref, w1_ref, b1_ref, w2_ref, b2_ref, w3_ref, b3_ref, o_ref):
    # Layer 1: bf16 x bf16 -> f32 accumulate on the MXU; bias + ReLU in f32.
    h1 = jnp.dot(x_ref[...], w1_ref[...], preferred_element_type=jnp.float32)
    h1 = jnp.maximum(h1 + b1_ref[...], 0.0).astype(jnp.bfloat16)
    # Layer 2
    h2 = jnp.dot(h1, w2_ref[...], preferred_element_type=jnp.float32)
    h2 = jnp.maximum(h2 + b2_ref[...], 0.0).astype(jnp.bfloat16)
    # Output layer (logits; columns 4..127 are zero-padded weights/bias).
    out = jnp.dot(h2, w3_ref[...], preferred_element_type=jnp.float32)
    o_ref[...] = (out + b3_ref[...]).astype(o_ref.dtype)


def patch_classifier(x, w1, b1, w2, b2, w3, b3, *, batch_tile=256):
    """Fused 3-layer MLP forward.

    x  : [B, 1536] float32 (cast to bf16 internally)
    wN : [in, out] (transposed vs. nn.Linear), bN : [1, out]
    Returns [B, 4] float32 logits.
    """
    B = x.shape[0]
    # Keep the tile a multiple of 8 (sublane) but never bigger than the padded
    # batch; real workloads get the full 256-row MXU-friendly tile.
    batch_tile = max(8, _round_up(batch_tile, 8))
    tile = min(batch_tile, _round_up(B, 8))
    Bp = _round_up(B, tile)

    # bf16 inputs / weights, f32 biases.
    xb = x.astype(jnp.bfloat16)
    if Bp != B:
        xb = jnp.pad(xb, ((0, Bp - B), (0, 0)))
    w1b = w1.astype(jnp.bfloat16)
    w2b = w2.astype(jnp.bfloat16)
    b1f = b1.reshape(1, HIDDEN1).astype(jnp.float32)
    b2f = b2.reshape(1, HIDDEN2).astype(jnp.float32)
    # Zero-pad the last layer from 4 -> 128 output lanes (lane-dense stores).
    w3p = jnp.zeros((HIDDEN2, N_PAD), jnp.bfloat16)
    w3p = w3p.at[:, :N_LABELS].set(w3.astype(jnp.bfloat16))
    b3p = jnp.zeros((1, N_PAD), jnp.float32)
    b3p = b3p.at[:, :N_LABELS].set(b3.reshape(1, N_LABELS).astype(jnp.float32))

    grid = (Bp // tile,)

    flops = 2 * Bp * (COUPLE_SIZE * HIDDEN1 + HIDDEN1 * HIDDEN2 + HIDDEN2 * N_PAD)
    bytes_accessed = (
        Bp * COUPLE_SIZE * 2                                              # x (bf16)
        + (COUPLE_SIZE * HIDDEN1 + HIDDEN1 * HIDDEN2 + HIDDEN2 * N_PAD) * 2  # weights (bf16)
        + (HIDDEN1 + HIDDEN2 + N_PAD) * 4                                 # biases (f32)
        + Bp * N_PAD * 4                                                  # out (f32)
    )

    out = pl.pallas_call(
        _mlp_kernel,
        out_shape=jax.ShapeDtypeStruct((Bp, N_PAD), jnp.float32),
        grid_spec=pltpu.PrefetchScalarGridSpec(
            num_scalar_prefetch=0,
            grid=grid,
            in_specs=[
                # activations: tile over batch
                pl.BlockSpec((tile, COUPLE_SIZE), lambda i: (i, 0)),
                # weights / biases: whole arrays, constant block index
                pl.BlockSpec((COUPLE_SIZE, HIDDEN1), lambda i: (0, 0)),
                pl.BlockSpec((1, HIDDEN1), lambda i: (0, 0)),
                pl.BlockSpec((HIDDEN1, HIDDEN2), lambda i: (0, 0)),
                pl.BlockSpec((1, HIDDEN2), lambda i: (0, 0)),
                pl.BlockSpec((HIDDEN2, N_PAD), lambda i: (0, 0)),
                pl.BlockSpec((1, N_PAD), lambda i: (0, 0)),
            ],
            out_specs=pl.BlockSpec((tile, N_PAD), lambda i: (i, 0)),
        ),
        compiler_params=pltpu.CompilerParams(
            dimension_semantics=("parallel",),
            vmem_limit_bytes=32 * 1024 * 1024,
        ),
        cost_estimate=pl.CostEstimate(
            flops=flops, transcendentals=0, bytes_accessed=bytes_accessed),
    )(xb, w1b, b1f, w2b, b2f, w3p, b3p)

    return out[:B, :N_LABELS]


def _init_linear(key, in_f, out_f):
    """Deterministic init mimicking nn.Linear (uniform +/- 1/sqrt(in_f)).
    Returns W in [in, out] layout and b as [1, out]."""
    kw, kb = jax.random.split(key)
    bound = 1.0 / (in_f ** 0.5)
    w = jax.random.uniform(kw, (in_f, out_f), jnp.float32, -bound, bound)
    b = jax.random.uniform(kb, (1, out_f), jnp.float32, -bound, bound)
    return w, b


def _ref_forward(x, w1, b1, w2, b2, w3, b3):
    """Pure-JAX reference using the same bf16-input / f32-accumulate math."""
    bf = jnp.bfloat16
    h1 = jnp.maximum(
        jnp.dot(x.astype(bf), w1.astype(bf), preferred_element_type=jnp.float32) + b1, 0.0)
    h2 = jnp.maximum(
        jnp.dot(h1.astype(bf), w2.astype(bf), preferred_element_type=jnp.float32) + b2, 0.0)
    return jnp.dot(h2.astype(bf), w3.astype(bf), preferred_element_type=jnp.float32) + b3


if __name__ == "__main__":
    key = jax.random.PRNGKey(0)
    k_x, k1, k2, k3 = jax.random.split(key, 4)

    B = 10  # small batch; deliberately not a multiple of 8 to exercise padding
    x = jax.random.normal(k_x, (B, COUPLE_SIZE), jnp.float32)

    w1, b1 = _init_linear(k1, COUPLE_SIZE, HIDDEN1)
    w2, b2 = _init_linear(k2, HIDDEN1, HIDDEN2)
    w3, b3 = _init_linear(k3, HIDDEN2, N_LABELS)

    out = patch_classifier(x, w1, b1, w2, b2, w3, b3)
    out = jax.block_until_ready(out)

    ref = _ref_forward(x, w1, b1, w2, b2, w3, b3)
    assert out.shape == (B, N_LABELS)
    assert jnp.allclose(out, ref, atol=1e-2, rtol=1e-2)

    print("KERNEL_OK")
</pallas_src>

<mosaic_0001>
module attributes {stable_mosaic.version = 11 : i64} {
  func.func @_mlp_kernel(%arg0: i32, %arg1: memref<16x1536xbf16, #tpu.memory_space<vmem>>, %arg2: memref<1536x512xbf16, #tpu.memory_space<vmem>>, %arg3: memref<1x512xf32, #tpu.memory_space<vmem>>, %arg4: memref<512x256xbf16, #tpu.memory_space<vmem>>, %arg5: memref<1x256xf32, #tpu.memory_space<vmem>>, %arg6: memref<256x128xbf16, #tpu.memory_space<vmem>>, %arg7: memref<1x128xf32, #tpu.memory_space<vmem>>, %arg8: memref<16x128xf32, #tpu.memory_space<vmem>>) attributes {dimension_semantics = [#tpu.dimension_semantics<parallel>], iteration_bounds = array<i64: 1>, scalar_prefetch = 0 : i64, scratch_operands = 0 : i64, tpu.core_type = #tpu.core_type<tc>, window_params = [{transform_indices = @transform_0, window_bounds = array<i64: 16, 1536>}, {pipeline_mode = #tpu.pipeline_mode<synchronous>, transform_indices = @transform_1, window_bounds = array<i64: 1536, 512>}, {pipeline_mode = #tpu.pipeline_mode<synchronous>, transform_indices = @transform_2, window_bounds = array<i64: 1, 512>}, {pipeline_mode = #tpu.pipeline_mode<synchronous>, transform_indices = @transform_3, window_bounds = array<i64: 512, 256>}, {pipeline_mode = #tpu.pipeline_mode<synchronous>, transform_indices = @transform_4, window_bounds = array<i64: 1, 256>}, {pipeline_mode = #tpu.pipeline_mode<synchronous>, transform_indices = @transform_5, window_bounds = array<i64: 256, 128>}, {pipeline_mode = #tpu.pipeline_mode<synchronous>, transform_indices = @transform_6, window_bounds = array<i64: 1, 128>}, {transform_indices = @transform_7, window_bounds = array<i64: 16, 128>}]} {
    %c0 = arith.constant 0 : index
    %c0_0 = arith.constant 0 : index
    %0 = vector.load %arg1[%c0, %c0_0] : memref<16x1536xbf16, #tpu.memory_space<vmem>>, vector<16x1536xbf16>
    %c0_1 = arith.constant 0 : index
    %c0_2 = arith.constant 0 : index
    %1 = vector.load %arg2[%c0_1, %c0_2] : memref<1536x512xbf16, #tpu.memory_space<vmem>>, vector<1536x512xbf16>
    %cst = arith.constant dense<0.000000e+00> : vector<16x512xf32>
    %2 = tpu.matmul %0, %1, %cst {dimension_numbers = #tpu.dot_dimension_numbers<[1], [0], [0], [1], [0, 0, 1, 1], [], []>} : vector<16x1536xbf16>, vector<1536x512xbf16>, vector<16x512xf32> -> vector<16x512xf32>
    %c0_3 = arith.constant 0 : index
    %c0_4 = arith.constant 0 : index
    %3 = vector.load %arg3[%c0_3, %c0_4] : memref<1x512xf32, #tpu.memory_space<vmem>>, vector<1x512xf32>
    %4 = vector.broadcast %3 : vector<1x512xf32> to vector<16x512xf32>
    %5 = arith.addf %2, %4 : vector<16x512xf32>
    %cst_5 = arith.constant 0.000000e+00 : f32
    %6 = vector.broadcast %cst_5 : f32 to vector<16x512xf32>
    %7 = arith.maximumf %5, %6 : vector<16x512xf32>
    %8 = arith.truncf %7 : vector<16x512xf32> to vector<16x512xbf16>
    %c0_6 = arith.constant 0 : index
    %c0_7 = arith.constant 0 : index
    %9 = vector.load %arg4[%c0_6, %c0_7] : memref<512x256xbf16, #tpu.memory_space<vmem>>, vector<512x256xbf16>
    %cst_8 = arith.constant dense<0.000000e+00> : vector<16x256xf32>
    %10 = tpu.matmul %8, %9, %cst_8 {dimension_numbers = #tpu.dot_dimension_numbers<[1], [0], [0], [1], [0, 0, 1, 1], [], []>} : vector<16x512xbf16>, vector<512x256xbf16>, vector<16x256xf32> -> vector<16x256xf32>
    %c0_9 = arith.constant 0 : index
    %c0_10 = arith.constant 0 : index
    %11 = vector.load %arg5[%c0_9, %c0_10] : memref<1x256xf32, #tpu.memory_space<vmem>>, vector<1x256xf32>
    %12 = vector.broadcast %11 : vector<1x256xf32> to vector<16x256xf32>
    %13 = arith.addf %10, %12 : vector<16x256xf32>
    %cst_11 = arith.constant 0.000000e+00 : f32
    %14 = vector.broadcast %cst_11 : f32 to vector<16x256xf32>
    %15 = arith.maximumf %13, %14 : vector<16x256xf32>
    %16 = arith.truncf %15 : vector<16x256xf32> to vector<16x256xbf16>
    %c0_12 = arith.constant 0 : index
    %c0_13 = arith.constant 0 : index
    %17 = vector.load %arg6[%c0_12, %c0_13] : memref<256x128xbf16, #tpu.memory_space<vmem>>, vector<256x128xbf16>
    %cst_14 = arith.constant dense<0.000000e+00> : vector<16x128xf32>
    %18 = tpu.matmul %16, %17, %cst_14 {dimension_numbers = #tpu.dot_dimension_numbers<[1], [0], [0], [1], [0, 0, 1, 1], [], []>} : vector<16x256xbf16>, vector<256x128xbf16>, vector<16x128xf32> -> vector<16x128xf32>
    %c0_15 = arith.constant 0 : index
    %c0_16 = arith.constant 0 : index
    %19 = vector.load %arg7[%c0_15, %c0_16] : memref<1x128xf32, #tpu.memory_space<vmem>>, vector<1x128xf32>
    %20 = vector.broadcast %19 : vector<1x128xf32> to vector<16x128xf32>
    %21 = arith.addf %18, %20 : vector<16x128xf32>
    %c0_17 = arith.constant 0 : index
    %c0_18 = arith.constant 0 : index
    %22 = vector.load %arg8[%c0_17, %c0_18] : memref<16x128xf32, #tpu.memory_space<vmem>>, vector<16x128xf32>
    tpu.vector_store %arg8[%c0_17, %c0_18], %21 {strides = array<i32>} : memref<16x128xf32, #tpu.memory_space<vmem>>, vector<16x128xf32>,
    return
  }
  func.func @transform_0(%arg0: i32) -> (i32, i32) {
    %c0_i32 = arith.constant 0 : i32
    %c0_i32_0 = arith.constant 0 : i32
    return %arg0, %c0_i32 : i32, i32
  }
  func.func @transform_1(%arg0: i32) -> (i32, i32) {
    %c0_i32 = arith.constant 0 : i32
    %c0_i32_0 = arith.constant 0 : i32
    %c0_i32_1 = arith.constant 0 : i32
    return %c0_i32, %c0_i32_0 : i32, i32
  }
  func.func @transform_2(%arg0: i32) -> (i32, i32) {
    %c0_i32 = arith.constant 0 : i32
    %c0_i32_0 = arith.constant 0 : i32
    %c0_i32_1 = arith.constant 0 : i32
    return %c0_i32, %c0_i32_0 : i32, i32
  }
  func.func @transform_3(%arg0: i32) -> (i32, i32) {
    %c0_i32 = arith.constant 0 : i32
    %c0_i32_0 = arith.constant 0 : i32
    %c0_i32_1 = arith.constant 0 : i32
    return %c0_i32, %c0_i32_0 : i32, i32
  }
  func.func @transform_4(%arg0: i32) -> (i32, i32) {
    %c0_i32 = arith.constant 0 : i32
    %c0_i32_0 = arith.constant 0 : i32
    %c0_i32_1 = arith.constant 0 : i32
    return %c0_i32, %c0_i32_0 : i32, i32
  }
  func.func @transform_5(%arg0: i32) -> (i32, i32) {
    %c0_i32 = arith.constant 0 : i32
    %c0_i32_0 = arith.constant 0 : i32
    %c0_i32_1 = arith.constant 0 : i32
    return %c0_i32, %c0_i32_0 : i32, i32
  }
  func.func @transform_6(%arg0: i32) -> (i32, i32) {
    %c0_i32 = arith.constant 0 : i32
    %c0_i32_0 = arith.constant 0 : i32
    %c0_i32_1 = arith.constant 0 : i32
    return %c0_i32, %c0_i32_0 : i32, i32
  }
  func.func @transform_7(%arg0: i32) -> (i32, i32) {
    %c0_i32 = arith.constant 0 : i32
    %c0_i32_0 = arith.constant 0 : i32
    return %arg0, %c0_i32 : i32, i32
  }
}

</mosaic_0001>

<bundles_post_ra>
// kernel: tpu_custom_call.1
= control target key start
LH: loop header
LB: loop body
LE: loop exit
PB: predicated region body
PF: predicated region fallthrough
CT: control target
= control target key end

     0   :  { %12 = vsyncpa [#allocation3], 0  ;;  %s5426_s0 = inlined_call_operand.hbm [shape: bf16[16,1536], index: 0, kind: input, shape index: {}]   ;;  %s5427_s1 = inlined_call_operand.hbm [shape: bf16[1536,512], index: 1, kind: input, shape index: {}]   ;;  %s5428_s2 = inlined_call_operand.hbm [shape: f32[1,512], index: 2, kind: input, shape index: {}]   ;;  %s5429_s3 = inlined_call_operand.hbm [shape: bf16[512,256], index: 3, kind: input, shape index: {}]   ;;  %s5430_s4 = inlined_call_operand.hbm [shape: f32[1,256], index: 4, kind: input, shape index: {}]   ;;  %s5431_s5 = inlined_call_operand.hbm [shape: bf16[256,128], index: 5, kind: input, shape index: {}]   ;;  %s5432_s6 = inlined_call_operand.hbm [shape: f32[1,128], index: 6, kind: input, shape index: {}]   ;;  %s5433_s7 = inlined_call_operand.hbm [shape: f32[16,128], index: 7, kind: output, shape index: {}]  }
   0x1   :  { %13 = vsyncpa [#allocation6], 0 }
   0x2   :  { %14 = vsyncpa [#allocation9], 0 }
   0x3   :  { %15 = vsyncpa [#allocation12], 0 }
   0x4   :  { %16 = vsyncpa [#allocation4], 0  ;;  %s5192_s24 = smov [#allocation5]   ;;  %s5006_s28 = scalar_lea.hbm %s5427_s1, 49152 }
   0x5   :  { %s34_s25 = sshll.u32 %s5192_s24, 4  ;;  %p5007_p0 = scmp.ne.s32.totalorder %s5427_s1, %s5006_s28  ;;  %s35_s25 = int_to_ptr.vmem [resolvable:$true] %s34_s25 }
   0x6   :  { %p5010_p1 = scmp.lt.u32.totalorder %s5006_s28, %s5427_s1 }
   0x8   :  { %p5012_p2 = pnand %p5010_p1, %p5007_p0 }
   0xa   :  { %5015 = shalt.err (!%p5012_p2)
}
   0xb   :  { %s5016_s10 = scalar_lea.vmem %s35_s25, 49152  ;;  %p5021_p4 = scmp.lt.s32.totalorder %s35_s25, %s35_s25 }
   0xc   :  { %p5017_p3 = scmp.ne.s32.totalorder %s35_s25, %s5016_s10  ;;  %p5022_p5 = scmp.lt.s32.totalorder %s5016_s10, %s5016_s10 }
   0xe   :  { %p5023_p6 = por %p5022_p5, %p5021_p4 }
  0x10   :  { %p5024_p7 = pnand %p5023_p6, %p5017_p3 }
  0x12   :  { %5027 = shalt.err (!%p5024_p7)
}
  0x13   :  { %s5193_s11 = smov 256   ;;  %s5194_s12 = smov 16  }
  0x14   :  { %40 = dma.hbm_to_vmem [thread:$0]  %s5427_s1, 49152, %s35_s25, [#allocation6], %s5193_s11, %s5193_s11, %s5194_s12  }
  0x15   :  { %s5195_s15 = smov [#allocation8]   ;;  %s5028_s19 = scalar_lea.hbm %s5429_s3, 8192 }
  0x16   :  { %s56_s16 = sshll.u32 %s5195_s15, 4  ;;  %p5029_p8 = scmp.ne.s32.totalorder %s5429_s3, %s5028_s19  ;;  %s57_s16 = int_to_ptr.vmem [resolvable:$true] %s56_s16 }
  0x17   :  { %p5032_p9 = scmp.lt.u32.totalorder %s5028_s19, %s5429_s3 }
  0x19   :  { %p5034_p10 = pnand %p5032_p9, %p5029_p8 }
  0x1b   :  { %5037 = shalt.err (!%p5034_p10)
}
  0x1c   :  { %s5038_s24 = scalar_lea.vmem %s57_s16, 8192  ;;  %p5043_p12 = scmp.lt.s32.totalorder %s57_s16, %s57_s16 }
  0x1d   :  { %p5039_p11 = scmp.ne.s32.totalorder %s57_s16, %s5038_s24  ;;  %p5044_p13 = scmp.lt.s32.totalorder %s5038_s24, %s5038_s24 }
  0x1f   :  { %p5045_p0 = por %p5044_p13, %p5043_p12 }
  0x21   :  { %p5046_p1 = pnand %p5045_p0, %p5039_p11 }
  0x23   :  { %5049 = shalt.err (!%p5046_p1)
}
  0x24   :  { %s5196_s1 = smov 128   ;;  %s5197_s25 = smov 8  }
  0x25   :  { %62 = dma.hbm_to_vmem [thread:$0]  %s5429_s3, 8192, %s57_s16, [#allocation9], %s5196_s1, %s5196_s1, %s5197_s25  }
  0x26   :  { %s5198_s28 = smov [#allocation11]   ;;  %s5050_s9 = scalar_lea.hbm %s5431_s5, 2048 }
  0x27   :  { %s78_s29 = sshll.u32 %s5198_s28, 4  ;;  %p5051_p2 = scmp.ne.s32.totalorder %s5431_s5, %s5050_s9  ;;  %s79_s29 = int_to_ptr.vmem [resolvable:$true] %s78_s29 }
  0x28   :  { %p5054_p3 = scmp.lt.u32.totalorder %s5050_s9, %s5431_s5 }
  0x2a   :  { %p5056_p4 = pnand %p5054_p3, %p5051_p2 }
  0x2c   :  { %5059 = shalt.err (!%p5056_p4)
}
  0x2d   :  { %s5060_s14 = scalar_lea.vmem %s79_s29, 2048  ;;  %p5065_p6 = scmp.lt.s32.totalorder %s79_s29, %s79_s29 }
  0x2e   :  { %p5061_p5 = scmp.ne.s32.totalorder %s79_s29, %s5060_s14  ;;  %p5066_p7 = scmp.lt.s32.totalorder %s5060_s14, %s5060_s14 }
  0x30   :  { %p5067_p8 = por %p5066_p7, %p5065_p6 }
  0x32   :  { %p5068_p9 = pnand %p5067_p8, %p5061_p5 }
  0x34   :  { %5071 = shalt.err (!%p5068_p9)
}
  0x35   :  { %s5199_s3 = smov 64   ;;  %s5200_s15 = smov 4  }
  0x36   :  { %84 = dma.hbm_to_vmem [thread:$0]  %s5431_s5, 2048, %s79_s29, [#allocation12], %s5199_s3, %s5199_s3, %s5200_s15  }
  0x37   :  { %s5201_s18 = smov [#allocation2]   ;;  %s5072_s22 = scalar_lea.hbm %s5426_s0, 1536 }
  0x38   :  { %s22_s19 = sshll.u32 %s5201_s18, 4  ;;  %p5073_p10 = scmp.ne.s32.totalorder %s5426_s0, %s5072_s22  ;;  %s23_s19 = int_to_ptr.vmem [resolvable:$true] %s22_s19 }
  0x39   :  { %p5076_p11 = scmp.lt.u32.totalorder %s5072_s22, %s5426_s0 }
  0x3b   :  { %p5078_p12 = pnand %p5076_p11, %p5073_p10 }
  0x3d   :  { %5081 = shalt.err (!%p5078_p12)
}
  0x3e   :  { %s5082_s28 = scalar_lea.vmem %s23_s19, 1536  ;;  %p5087_p0 = scmp.lt.s32.totalorder %s23_s19, %s23_s19 }
  0x3f   :  { %p5083_p13 = scmp.ne.s32.totalorder %s23_s19, %s5082_s28  ;;  %p5088_p1 = scmp.lt.s32.totalorder %s5082_s28, %s5082_s28 }
  0x41   :  { %p5089_p2 = por %p5088_p1, %p5087_p0 }
  0x43   :  { %p5090_p3 = pnand %p5089_p2, %p5083_p13 }
  0x45   :  { %5093 = shalt.err (!%p5090_p3)
}
  0x46   :  { %s5202_s5 = smov 768   ;;  %s5203_s29 = smov 48  }
  0x47   :  { %28 = dma.hbm_to_vmem [thread:$0]  %s5426_s0, 1536, %s23_s19, [#allocation3], %s5202_s5, %s5202_s5, %s5203_s29  }
  0x48   :  { %s5204_s9 = smov [#allocation7]   ;;  %s5205_s11 = smov [#allocation10]  }
  0x49   :  { %s47_s10 = sshll.u32 %s5204_s9, 4  ;;  %s69_s12 = sshll.u32 %s5205_s11, 4  ;;  %s48_s10 = int_to_ptr.vmem [resolvable:$true] %s47_s10  ;;  %s70_s12 = int_to_ptr.vmem [resolvable:$true] %s69_s12 }
  0x4a   :  { %s5094_s3 = scalar_lea.hbm %s5428_s2, 64 }
  0x4b   :  { %p5095_p4 = scmp.ne.s32.totalorder %s5428_s2, %s5094_s3  ;;  %p5098_p5 = scmp.lt.u32.totalorder %s5094_s3, %s5428_s2 }
  0x4d   :  { %p5100_p6 = pnand %p5098_p5, %p5095_p4 }
  0x4f   :  { %5103 = shalt.err (!%p5100_p6)
}
  0x50   :  { %s5104_s0 = scalar_lea.vmem %s48_s10, 64  ;;  %p5109_p8 = scmp.lt.s32.totalorder %s48_s10, %s48_s10 }
  0x51   :  { %p5105_p7 = scmp.ne.s32.totalorder %s48_s10, %s5104_s0  ;;  %p5110_p9 = scmp.lt.s32.totalorder %s5104_s0, %s5104_s0 }
  0x53   :  { %p5111_p10 = por %p5110_p9, %p5109_p8 }
  0x55   :  { %p5112_p11 = pnand %p5111_p10, %p5105_p7 }
  0x57   :  { %5115 = shalt.err (!%p5112_p11)
}
  0x58   :  { %50 = dma.hbm_to_vmem [thread:$0]  %s5428_s2, 64, %s48_s10, [#allocation6]  }
  0x59   :  { %s5116_s23 = scalar_lea.hbm %s5430_s4, 32 }
  0x5a   :  { %p5117_p12 = scmp.ne.s32.totalorder %s5430_s4, %s5116_s23  ;;  %p5120_p13 = scmp.lt.u32.totalorder %s5116_s23, %s5430_s4 }
  0x5c   :  { %p5122_p0 = pnand %p5120_p13, %p5117_p12 }
  0x5e   :  { %5125 = shalt.err (!%p5122_p0)
}
  0x5f   :  { %s5126_s5 = scalar_lea.vmem %s70_s12, 32  ;;  %p5131_p2 = scmp.lt.s32.totalorder %s70_s12, %s70_s12 }
  0x60   :  { %p5127_p1 = scmp.ne.s32.totalorder %s70_s12, %s5126_s5  ;;  %p5132_p3 = scmp.lt.s32.totalorder %s5126_s5, %s5126_s5 }
  0x62   :  { %p5133_p4 = por %p5132_p3, %p5131_p2 }
  0x64   :  { %p5134_p5 = pnand %p5133_p4, %p5127_p1 }
  0x66   :  { %5137 = shalt.err (!%p5134_p5)
}
  0x67   :  { %72 = dma.hbm_to_vmem [thread:$0]  %s5430_s4, 32, %s70_s12, [#allocation9]  }
  0x68   :  { %s5206_s30 = smov [#allocation13]   ;;  %s5138_s11 = scalar_lea.hbm %s5432_s6, 16 }
  0x69   :  { %s91_s8 = sshll.u32 %s5206_s30, 4  ;;  %p5139_p6 = scmp.ne.s32.totalorder %s5432_s6, %s5138_s11  ;;  %s92_s8 = int_to_ptr.vmem [resolvable:$true] %s91_s8 }
  0x6a   :  { %p5142_p7 = scmp.lt.u32.totalorder %s5138_s11, %s5432_s6 }
  0x6c   :  { %p5144_p8 = pnand %p5142_p7, %p5139_p6 }
  0x6e   :  { %5147 = shalt.err (!%p5144_p8)
}
  0x6f   :  { %s5148_s16 = scalar_lea.vmem %s92_s8, 16  ;;  %s5152_s4 = scalar_lea.vmem %s92_s8, 32 }
  0x70   :  { %p5149_p9 = scmp.ne.s32.totalorder %s92_s8, %s5148_s16  ;;  %p5153_p10 = scmp.lt.s32.totalorder %s92_s8, %s92_s8 }
  0x71   :  { %p5154_p11 = scmp.lt.s32.totalorder %s5152_s4, %s5148_s16 }
  0x73   :  { %p5155_p12 = por %p5154_p11, %p5153_p10 }
  0x75   :  { %p5156_p13 = pnand %p5155_p12, %p5149_p9 }
  0x77   :  { %5159 = shalt.err (!%p5156_p13)
}
  0x78   :  { %94 = dma.hbm_to_vmem [thread:$0]  %s5432_s6, 16, %s92_s8, [#allocation12]  }
  0x79   :  { %5182 = dma.done.wait [#allocation3], 1536  }
  0x7a   :  { %5183 = vsyncadd [#allocation3], 4294965760 }
  0x7b   :  { %5184 = dma.done.wait [#allocation6], 49216  }
  0x7c   :  { %5185 = vsyncadd [#allocation6], 4294918080 }
  0x7d   :  { %5186 = dma.done.wait [#allocation9], 8224  }
  0x7e   :  { %5187 = vsyncadd [#allocation9], 4294959072 }
  0x7f   :  { %5188 = dma.done.wait [#allocation12], 2064  }
  0x80   :  { %5189 = vsyncadd [#allocation12], 4294965232  ;;  %v4300_v0 = vld [vmem:[#allocation5 + $0x4] ss:$16 sps:$4 sm:$0xff]   ;;  %v4304_v2 = vld [vmem:[#allocation5] ss:$16 sps:$4 sm:$0xff]  }
  0x81   :  { %v4302_v1 = vld [vmem:[#allocation5 + $0x204] ss:$16 sps:$4 sm:$0xff]   ;;  %2515 = vmatprep.subr.bf16.mxu1 %v4300_v0  ;;  %v4305_v3 = vld [vmem:[#allocation5 + $0x200] ss:$16 sps:$4 sm:$0xff]   ;;  %v5335_v51 = vld [vmem:[#allocation2 + $0xc] ss:$48 sps:$4 sm:$0xff]  }
  0x82   :  { %2558 = vmatprep.subr.bf16.mxu0 %v4302_v1  ;;  %v4306_v4 = vld [vmem:[#allocation5 + $0x24] ss:$16 sps:$4 sm:$0xff]   ;;  %2516 = vmatpush1.bf16.msra.mxu1 %v4304_v2  ;;  %v4310_v6 = vld [vmem:[#allocation5 + $0x20] ss:$16 sps:$4 sm:$0xff]   ;;  %s5207_s6 = smov [#allocation14]  }
  0x83   :  { %2559 = vmatpush1.bf16.msra.mxu0 %v4305_v3  ;;  %v4308_v5 = vld [vmem:[#allocation5 + $0x224] ss:$16 sps:$4 sm:$0xff]   ;;  %2517 = vmatprep.subr.bf16.mxu1 %v4306_v4  ;;  %v4311_v7 = vld [vmem:[#allocation5 + $0x220] ss:$16 sps:$4 sm:$0xff]   ;;  %v4407_v3 = vld [vmem:[#allocation5 + $0xc] ss:$16 sps:$4 sm:$0xff]  }
  0x84   :  { %2560 = vmatprep.subr.bf16.mxu0 %v4308_v5  ;;  %v4312_v8 = vld [vmem:[#allocation5 + $0x44] ss:$16 sps:$4 sm:$0xff]   ;;  %v4316_v10 = vld [vmem:[#allocation5 + $0x40] ss:$16 sps:$4 sm:$0xff]   ;;  %2590 = vmatprep.mubr.bf16.mxu0 %v5335_v51  ;;  %v5340_v5 = vld [vmem:[#allocation2 + $0x8] ss:$48 sps:$4 sm:$0xff]  }
  0x85   :  { %v4314_v9 = vld [vmem:[#allocation5 + $0x244] ss:$16 sps:$4 sm:$0xff]   ;;  %v4317_v11 = vld [vmem:[#allocation5 + $0x240] ss:$16 sps:$4 sm:$0xff]   ;;  %s3714_s18 = sshll.u32 %s5207_s6, 4  ;;  %s3715_s18 = int_to_ptr.vmem [resolvable:$true] %s3714_s18 }
  0x86   :  { %2518 = vmatpush1.bf16.msra.mxu1 %v4310_v6  ;;  %v4318_v12 = vld [vmem:[#allocation5 + $0x64] ss:$16 sps:$4 sm:$0xff]   ;;  %v4322_v14 = vld [vmem:[#allocation5 + $0x60] ss:$16 sps:$4 sm:$0xff]   ;;  %s5160_s0 = scalar_lea.vmem %s3715_s18, 256  ;;  %p5165_p1 = scmp.lt.s32.totalorder %s3715_s18, %s3715_s18 }
  0x87   :  { %2561 = vmatpush1.bf16.msra.mxu0 %v4311_v7  ;;  %2519 = vmatprep.subr.bf16.mxu1 %v4312_v8  ;;  %v4320_v13 = vld [vmem:[#allocation5 + $0x264] ss:$16 sps:$4 sm:$0xff]   ;;  %v4323_v15 = vld [vmem:[#allocation5 + $0x260] ss:$16 sps:$4 sm:$0xff]   ;;  %v4405_v7 = vld [vmem:[#allocation5 + $0x8] ss:$16 sps:$4 sm:$0xff]   ;;  %p5161_p0 = scmp.ne.s32.totalorder %s3715_s18, %s5160_s0  ;;  %p5166_p2 = scmp.lt.s32.totalorder %s5160_s0, %s5160_s0 }
  0x88   :  { %2562 = vmatprep.subr.bf16.mxu0 %v4314_v9  ;;  %v4324_v16 = vld [vmem:[#allocation5 + $0x84] ss:$16 sps:$4 sm:$0xff]   ;;  %v4328_v18 = vld [vmem:[#allocation5 + $0x80] ss:$16 sps:$4 sm:$0xff]   ;;  %v4413_v9 = vld [vmem:[#allocation5 + $0x2c] ss:$16 sps:$4 sm:$0xff]  }
  0x89   :  { %v4326_v17 = vld [vmem:[#allocation5 + $0x284] ss:$16 sps:$4 sm:$0xff]   ;;  %v4329_v19 = vld [vmem:[#allocation5 + $0x280] ss:$16 sps:$4 sm:$0xff]   ;;  %p5167_p3 = por %p5166_p2, %p5165_p1 }
  0x8a   :  { %2520 = vmatpush1.bf16.msra.mxu1 %v4316_v10  ;;  %v4330_v20 = vld [vmem:[#allocation5 + $0xa4] ss:$16 sps:$4 sm:$0xff]   ;;  %v4334_v22 = vld [vmem:[#allocation5 + $0xa0] ss:$16 sps:$4 sm:$0xff]  }
  0x8b   :  { %2563 = vmatpush1.bf16.msra.mxu0 %v4317_v11  ;;  %2521 = vmatprep.subr.bf16.mxu1 %v4318_v12  ;;  %v4332_v21 = vld [vmem:[#allocation5 + $0x2a4] ss:$16 sps:$4 sm:$0xff]   ;;  %v4335_v23 = vld [vmem:[#allocation5 + $0x2a0] ss:$16 sps:$4 sm:$0xff]   ;;  %v4411_v11 = vld [vmem:[#allocation5 + $0x28] ss:$16 sps:$4 sm:$0xff]   ;;  %p5168_p4 = pnand %p5167_p3, %p5161_p0 }
  0x8c   :  { %2564 = vmatprep.subr.bf16.mxu0 %v4320_v13  ;;  %v4336_v24 = vld [vmem:[#allocation5 + $0xc4] ss:$16 sps:$4 sm:$0xff]   ;;  %v4340_v26 = vld [vmem:[#allocation5 + $0xc0] ss:$16 sps:$4 sm:$0xff]   ;;  %v4419_v13 = vld [vmem:[#allocation5 + $0x4c] ss:$16 sps:$4 sm:$0xff]  }
  0x8d   :  { %v4338_v25 = vld [vmem:[#allocation5 + $0x2c4] ss:$16 sps:$4 sm:$0xff]   ;;  %v4341_v27 = vld [vmem:[#allocation5 + $0x2c0] ss:$16 sps:$4 sm:$0xff]  }
  0x8e   :  { %2522 = vmatpush1.bf16.msra.mxu1 %v4322_v14  ;;  %v4342_v28 = vld [vmem:[#allocation5 + $0xe4] ss:$16 sps:$4 sm:$0xff]   ;;  %v4346_v30 = vld [vmem:[#allocation5 + $0xe0] ss:$16 sps:$4 sm:$0xff]  }
  0x8f   :  { %2565 = vmatpush1.bf16.msra.mxu0 %v4323_v15  ;;  %2523 = vmatprep.subr.bf16.mxu1 %v4324_v16  ;;  %v4344_v29 = vld [vmem:[#allocation5 + $0x2e4] ss:$16 sps:$4 sm:$0xff]   ;;  %v4347_v31 = vld [vmem:[#allocation5 + $0x2e0] ss:$16 sps:$4 sm:$0xff]   ;;  %v4417_v15 = vld [vmem:[#allocation5 + $0x48] ss:$16 sps:$4 sm:$0xff]  }
  0x90   :  { %2566 = vmatprep.subr.bf16.mxu0 %v4326_v17  ;;  %v4348_v32 = vld [vmem:[#allocation5 + $0x104] ss:$16 sps:$4 sm:$0xff]   ;;  %v4352_v34 = vld [vmem:[#allocation5 + $0x100] ss:$16 sps:$4 sm:$0xff]   ;;  %v4425_v17 = vld [vmem:[#allocation5 + $0x6c] ss:$16 sps:$4 sm:$0xff]  }
  0x91   :  { %v4350_v33 = vld [vmem:[#allocation5 + $0x304] ss:$16 sps:$4 sm:$0xff]   ;;  %v4353_v35 = vld [vmem:[#allocation5 + $0x300] ss:$16 sps:$4 sm:$0xff]  }
  0x92   :  { %2524 = vmatpush1.bf16.msra.mxu1 %v4328_v18  ;;  %v4354_v36 = vld [vmem:[#allocation5 + $0x124] ss:$16 sps:$4 sm:$0xff]   ;;  %v4358_v38 = vld [vmem:[#allocation5 + $0x120] ss:$16 sps:$4 sm:$0xff]  }
  0x93   :  { %2567 = vmatpush1.bf16.msra.mxu0 %v4329_v19  ;;  %2525 = vmatprep.subr.bf16.mxu1 %v4330_v20  ;;  %v4356_v37 = vld [vmem:[#allocation5 + $0x324] ss:$16 sps:$4 sm:$0xff]   ;;  %v4359_v39 = vld [vmem:[#allocation5 + $0x320] ss:$16 sps:$4 sm:$0xff]   ;;  %v4423_v19 = vld [vmem:[#allocation5 + $0x68] ss:$16 sps:$4 sm:$0xff]  }
  0x94   :  { %2568 = vmatprep.subr.bf16.mxu0 %v4332_v21  ;;  %v4360_v40 = vld [vmem:[#allocation5 + $0x144] ss:$16 sps:$4 sm:$0xff]   ;;  %v4364_v42 = vld [vmem:[#allocation5 + $0x140] ss:$16 sps:$4 sm:$0xff]   ;;  %v4431_v21 = vld [vmem:[#allocation5 + $0x8c] ss:$16 sps:$4 sm:$0xff]  }
  0x95   :  { %v4362_v41 = vld [vmem:[#allocation5 + $0x344] ss:$16 sps:$4 sm:$0xff]   ;;  %v4365_v43 = vld [vmem:[#allocation5 + $0x340] ss:$16 sps:$4 sm:$0xff]  }
  0x96   :  { %2526 = vmatpush1.bf16.msra.mxu1 %v4334_v22  ;;  %v4366_v44 = vld [vmem:[#allocation5 + $0x164] ss:$16 sps:$4 sm:$0xff]   ;;  %v4370_v46 = vld [vmem:[#allocation5 + $0x160] ss:$16 sps:$4 sm:$0xff]  }
  0x97   :  { %2569 = vmatpush1.bf16.msra.mxu0 %v4335_v23  ;;  %2527 = vmatprep.subr.bf16.mxu1 %v4336_v24  ;;  %v4368_v45 = vld [vmem:[#allocation5 + $0x364] ss:$16 sps:$4 sm:$0xff]   ;;  %v4371_v47 = vld [vmem:[#allocation5 + $0x360] ss:$16 sps:$4 sm:$0xff]   ;;  %v4429_v23 = vld [vmem:[#allocation5 + $0x88] ss:$16 sps:$4 sm:$0xff]  }
  0x98   :  { %2570 = vmatprep.subr.bf16.mxu0 %v4338_v25  ;;  %v4372_v48 = vld [vmem:[#allocation5 + $0x184] ss:$16 sps:$4 sm:$0xff]   ;;  %v4376_v52 = vld [vmem:[#allocation5 + $0x180] ss:$16 sps:$4 sm:$0xff]   ;;  %v4437_v25 = vld [vmem:[#allocation5 + $0xac] ss:$16 sps:$4 sm:$0xff]  }
  0x99   :  { %v4398_v49 = vld [vmem:[#allocation2 + $0x4] ss:$48 sps:$4 sm:$0xff]   ;;  %v4377_v53 = vld [vmem:[#allocation5 + $0x380] ss:$16 sps:$4 sm:$0xff]  }
  0x9a   :  { %2528 = vmatpush1.bf16.msra.mxu1 %v4340_v26  ;;  %v4374_v50 = vld [vmem:[#allocation5 + $0x384] ss:$16 sps:$4 sm:$0xff]   ;;  %2547 = vmatprep.mubr.bf16.mxu1 %v4398_v49  ;;  %v4382_v56 = vld [vmem:[#allocation5 + $0x1a0] ss:$16 sps:$4 sm:$0xff]  }
  0x9b   :  { %2571 = vmatpush1.bf16.msra.mxu0 %v4341_v27  ;;  %2529 = vmatprep.subr.bf16.mxu1 %v4342_v28  ;;  %v4378_v54 = vld [vmem:[#allocation5 + $0x1a4] ss:$16 sps:$4 sm:$0xff]   ;;  %v4383_v57 = vld [vmem:[#allocation5 + $0x3a0] ss:$16 sps:$4 sm:$0xff]   ;;  %v4435_v27 = vld [vmem:[#allocation5 + $0xa8] ss:$16 sps:$4 sm:$0xff]  }
  0x9c   :  { %2572 = vmatprep.subr.bf16.mxu0 %v4344_v29  ;;  %v4380_v55 = vld [vmem:[#allocation5 + $0x3a4] ss:$16 sps:$4 sm:$0xff]   ;;  %v4388_v60 = vld [vmem:[#allocation5 + $0x1c0] ss:$16 sps:$4 sm:$0xff]   ;;  %v4443_v29 = vld [vmem:[#allocation5 + $0xcc] ss:$16 sps:$4 sm:$0xff]  }
  0x9d   :  { %v4384_v58 = vld [vmem:[#allocation5 + $0x1c4] ss:$16 sps:$4 sm:$0xff]   ;;  %v4389_v61 = vld [vmem:[#allocation5 + $0x3c0] ss:$16 sps:$4 sm:$0xff]  }
  0x9e   :  { %2530 = vmatpush1.bf16.msra.mxu1 %v4346_v30  ;;  %v4386_v59 = vld [vmem:[#allocation5 + $0x3c4] ss:$16 sps:$4 sm:$0xff]   ;;  %v4394_v0 = vld [vmem:[#allocation5 + $0x1e0] ss:$16 sps:$4 sm:$0xff]  }
  0x9f   :  { %2573 = vmatpush1.bf16.msra.mxu0 %v4347_v31  ;;  %2531 = vmatprep.subr.bf16.mxu1 %v4348_v32  ;;  %v4390_v62 = vld [vmem:[#allocation5 + $0x1e4] ss:$16 sps:$4 sm:$0xff]   ;;  %v4395_v1 = vld [vmem:[#allocation5 + $0x3e0] ss:$16 sps:$4 sm:$0xff]   ;;  %v4441_v31 = vld [vmem:[#allocation5 + $0xc8] ss:$16 sps:$4 sm:$0xff]  }
  0xa0   :  { %2574 = vmatprep.subr.bf16.mxu0 %v4350_v33  ;;  %v4392_v63 = vld [vmem:[#allocation5 + $0x3e4] ss:$16 sps:$4 sm:$0xff]   ;;  %v5338_v4 = vld [vmem:[#allocation2] ss:$48 sps:$4 sm:$0xff]   ;;  %v4449_v33 = vld [vmem:[#allocation5 + $0xec] ss:$16 sps:$4 sm:$0xff]  }
  0xa1   :  { %v4404_v2 = vld [vmem:[#allocation5 + $0x404] ss:$16 sps:$4 sm:$0xff]   ;;  %v4402_v6 = vld [vmem:[#allocation5 + $0x400] ss:$16 sps:$4 sm:$0xff]  }
  0xa2   :  { %2532 = vmatpush1.bf16.msra.mxu1 %v4352_v34  ;;  %v4410_v8 = vld [vmem:[#allocation5 + $0x424] ss:$16 sps:$4 sm:$0xff]   ;;  %v4408_v10 = vld [vmem:[#allocation5 + $0x420] ss:$16 sps:$4 sm:$0xff]  }
  0xa3   :  { %2575 = vmatpush1.bf16.msra.mxu0 %v4353_v35  ;;  %2533 = vmatprep.subr.bf16.mxu1 %v4354_v36  ;;  %v4416_v12 = vld [vmem:[#allocation5 + $0x444] ss:$16 sps:$4 sm:$0xff]   ;;  %v4414_v14 = vld [vmem:[#allocation5 + $0x440] ss:$16 sps:$4 sm:$0xff]   ;;  %v4447_v36 = vld [vmem:[#allocation5 + $0xe8] ss:$16 sps:$4 sm:$0xff]  }
  0xa4   :  { %2576 = vmatprep.subr.bf16.mxu0 %v4356_v37  ;;  %v4422_v16 = vld [vmem:[#allocation5 + $0x464] ss:$16 sps:$4 sm:$0xff]   ;;  %v4420_v18 = vld [vmem:[#allocation5 + $0x460] ss:$16 sps:$4 sm:$0xff]  }
  0xa5   :  { %v4428_v20 = vld [vmem:[#allocation5 + $0x484] ss:$16 sps:$4 sm:$0xff]   ;;  %v4426_v22 = vld [vmem:[#allocation5 + $0x480] ss:$16 sps:$4 sm:$0xff]  }
  0xa6   :  { %2534 = vmatpush1.bf16.msra.mxu1 %v4358_v38  ;;  %v4434_v24 = vld [vmem:[#allocation5 + $0x4a4] ss:$16 sps:$4 sm:$0xff]   ;;  %v4432_v26 = vld [vmem:[#allocation5 + $0x4a0] ss:$16 sps:$4 sm:$0xff]   ;;  %v4455_v38 = vld [vmem:[#allocation5 + $0x10c] ss:$16 sps:$4 sm:$0xff]  }
  0xa7   :  { %2577 = vmatpush1.bf16.msra.mxu0 %v4359_v39  ;;  %2535 = vmatprep.subr.bf16.mxu1 %v4360_v40  ;;  %v4440_v28 = vld [vmem:[#allocation5 + $0x4c4] ss:$16 sps:$4 sm:$0xff]   ;;  %v4438_v30 = vld [vmem:[#allocation5 + $0x4c0] ss:$16 sps:$4 sm:$0xff]   ;;  %v4453_v40 = vld [vmem:[#allocation5 + $0x108] ss:$16 sps:$4 sm:$0xff]  }
  0xa8   :  { %2578 = vmatprep.subr.bf16.mxu0 %v4362_v41  ;;  %v4446_v32 = vld [vmem:[#allocation5 + $0x4e4] ss:$16 sps:$4 sm:$0xff]   ;;  %v4444_v35 = vld [vmem:[#allocation5 + $0x4e0] ss:$16 sps:$4 sm:$0xff]  }
  0xa9   :  { %v5344_v34 = vld [vmem:[#allocation2 + $0x14] ss:$48 sps:$4 sm:$0xff]   ;;  %v4450_v39 = vld [vmem:[#allocation5 + $0x500] ss:$16 sps:$4 sm:$0xff]  }
  0xaa   :  { %2536 = vmatpush1.bf16.msra.mxu1 %v4364_v42  ;;  %v4452_v37 = vld [vmem:[#allocation5 + $0x504] ss:$16 sps:$4 sm:$0xff]   ;;  %v4461_v42 = vld [vmem:[#allocation5 + $0x12c] ss:$16 sps:$4 sm:$0xff]  }
  0xab   :  { %2579 = vmatpush1.bf16.msra.mxu0 %v4365_v43  ;;  %2537 = vmatprep.subr.bf16.mxu1 %v4366_v44  ;;  %v4458_v41 = vld [vmem:[#allocation5 + $0x524] ss:$16 sps:$4 sm:$0xff]   ;;  %v4456_v43 = vld [vmem:[#allocation5 + $0x520] ss:$16 sps:$4 sm:$0xff]   ;;  %v4459_v44 = vld [vmem:[#allocation5 + $0x128] ss:$16 sps:$4 sm:$0xff]  }
  0xac   :  { %2580 = vmatprep.subr.bf16.mxu0 %v4368_v45  ;;  %v4464_v45 = vld [vmem:[#allocation5 + $0x544] ss:$16 sps:$4 sm:$0xff]  }
  0xae   :  { %2538 = vmatpush1.bf16.msra.mxu1 %v4370_v46  ;;  %v4467_v46 = vld [vmem:[#allocation5 + $0x14c] ss:$16 sps:$4 sm:$0xff]  }
  0xaf   :  { %2581 = vmatpush1.bf16.msra.mxu0 %v4371_v47  ;;  %2539 = vmatprep.subr.bf16.mxu1 %v4372_v48  ;;  %v4462_v47 = vld [vmem:[#allocation5 + $0x540] ss:$16 sps:$4 sm:$0xff]   ;;  %v4465_v48 = vld [vmem:[#allocation5 + $0x148] ss:$16 sps:$4 sm:$0xff]  }
  0xb0   :  { %2582 = vmatprep.subr.bf16.mxu0 %v4374_v50  ;;  %v4473_v50 = vld [vmem:[#allocation5 + $0x16c] ss:$16 sps:$4 sm:$0xff]  }
  0xb2   :  { %2540 = vmatpush1.bf16.msra.mxu1 %v4376_v52  ;;  %v4468_v52 = vld [vmem:[#allocation5 + $0x560] ss:$16 sps:$4 sm:$0xff]  }
  0xb3   :  { %2583 = vmatpush1.bf16.msra.mxu0 %v4377_v53  ;;  %2541 = vmatprep.subr.bf16.mxu1 %v4378_v54  ;;  %v4471_v53 = vld [vmem:[#allocation5 + $0x168] ss:$16 sps:$4 sm:$0xff]   ;;  %v4476_v54 = vld [vmem:[#allocation5 + $0x584] ss:$16 sps:$4 sm:$0xff]  }
  0xb4   :  { %2584 = vmatprep.subr.bf16.mxu0 %v4380_v55  ;;  %v4479_v55 = vld [vmem:[#allocation5 + $0x18c] ss:$16 sps:$4 sm:$0xff]  }
  0xb6   :  { %2542 = vmatpush1.bf16.msra.mxu1 %v4382_v56  ;;  %v4474_v56 = vld [vmem:[#allocation5 + $0x580] ss:$16 sps:$4 sm:$0xff]  }
  0xb7   :  { %2585 = vmatpush1.bf16.msra.mxu0 %v4383_v57  ;;  %2543 = vmatprep.subr.bf16.mxu1 %v4384_v58  ;;  %v4477_v57 = vld [vmem:[#allocation5 + $0x188] ss:$16 sps:$4 sm:$0xff]   ;;  %v4482_v58 = vld [vmem:[#allocation5 + $0x5a4] ss:$16 sps:$4 sm:$0xff]  }
  0xb8   :  { %2586 = vmatprep.subr.bf16.mxu0 %v4386_v59  ;;  %v4485_v59 = vld [vmem:[#allocation5 + $0x1ac] ss:$16 sps:$4 sm:$0xff]  }
  0xba   :  { %2544 = vmatpush1.bf16.msra.mxu1 %v4388_v60  ;;  %v4480_v60 = vld [vmem:[#allocation5 + $0x5a0] ss:$16 sps:$4 sm:$0xff]  }
  0xbb   :  { %2587 = vmatpush1.bf16.msra.mxu0 %v4389_v61  ;;  %2545 = vmatprep.subr.bf16.mxu1 %v4390_v62  ;;  %v4483_v61 = vld [vmem:[#allocation5 + $0x1a8] ss:$16 sps:$4 sm:$0xff]   ;;  %v4488_v62 = vld [vmem:[#allocation5 + $0x5c4] ss:$16 sps:$4 sm:$0xff]  }
  0xbc   :  { %2588 = vmatprep.subr.bf16.mxu0 %v4392_v63  ;;  %v4491_v63 = vld [vmem:[#allocation5 + $0x1cc] ss:$16 sps:$4 sm:$0xff]  }
  0xbe   :  { %2546 = vmatpush1.bf16.msra.mxu1 %v4394_v0  ;;  %v4486_v0 = vld [vmem:[#allocation5 + $0x5c0] ss:$16 sps:$4 sm:$0xff]  }
  0xbf   :  { %2589 = vmatpush1.bf16.msra.mxu0 %v4395_v1  ;;  %2773 = vmatprep.subr.bf16.mxu1 %v4407_v3  ;;  %v4489_v1 = vld [vmem:[#allocation5 + $0x1c8] ss:$16 sps:$4 sm:$0xff]   ;;  %v4497_v3 = vld [vmem:[#allocation5 + $0x1ec] ss:$16 sps:$4 sm:$0xff]  }
  0xc0   :  { %2601 = vmatprep.subr.bf16.mxu0 %v4404_v2  ;;  %v4494_v2 = vld [vmem:[#allocation5 + $0x5e4] ss:$16 sps:$4 sm:$0xff]  }
  0xc1   :  { %2548 = vmatmul.mubr.bf16.vlgmr.msra.gmra.mrb[0].mxu1 %v5338_v4 }
  0xc2   :  { %2591 = vmatmul.mubr.bf16.vlgmr.msra.gmra.mrb[0].mxu0 %v5340_v5  ;;  %2774 = vmatpush1.bf16.msra.mxu1 %v4405_v7  ;;  %v4495_v7 = vld [vmem:[#allocation5 + $0x1e8] ss:$16 sps:$4 sm:$0xff]  }
  0xc3   :  { %2602 = vmatpush1.bf16.msra.mxu0 %v4402_v6  ;;  %2775 = vmatprep.subr.bf16.mxu1 %v4413_v9  ;;  %v4492_v6 = vld [vmem:[#allocation5 + $0x5e0] ss:$16 sps:$4 sm:$0xff]   ;;  %v4506_v9 = vld [vmem:[#allocation5 + $0x20c] ss:$16 sps:$4 sm:$0xff]  }
  0xc4   :  { %2603 = vmatprep.subr.bf16.mxu0 %v4410_v8  ;;  %2805 = vmatprep.mubr.bf16.mxu1 %v4398_v49  ;;  %v4470_v49 = vld [vmem:[#allocation5 + $0x564] ss:$16 sps:$4 sm:$0xff]  }
  0xc5   :  { %2633 = vmatprep.mubr.bf16.mxu0 %v5344_v34  ;;  %v4503_v8 = vld [vmem:[#allocation5 + $0x604] ss:$16 sps:$4 sm:$0xff]  }
  0xc6   :  { %2776 = vmatpush1.bf16.msra.mxu1 %v4411_v11  ;;  %v4501_v11 = vld [vmem:[#allocation5 + $0x600] ss:$16 sps:$4 sm:$0xff]  }
  0xc7   :  { %2604 = vmatpush1.bf16.msra.mxu0 %v4408_v10  ;;  %2777 = vmatprep.subr.bf16.mxu1 %v4419_v13  ;;  %v5347_v10 = vld [vmem:[#allocation2 + $0x10] ss:$48 sps:$4 sm:$0xff]   ;;  %v4509_v13 = vld [vmem:[#allocation5 + $0x624] ss:$16 sps:$4 sm:$0xff]  }
  0xc8   :  { %2605 = vmatprep.subr.bf16.mxu0 %v4416_v12  ;;  %v4504_v12 = vld [vmem:[#allocation5 + $0x208] ss:$16 sps:$4 sm:$0xff]  }
  0xca   :  { %2778 = vmatpush1.bf16.msra.mxu1 %v4417_v15  ;;  %v4507_v15 = vld [vmem:[#allocation5 + $0x620] ss:$16 sps:$4 sm:$0xff]  }
  0xcb   :  { %2606 = vmatpush1.bf16.msra.mxu0 %v4414_v14  ;;  %2779 = vmatprep.subr.bf16.mxu1 %v4425_v17  ;;  %v4512_v14 = vld [vmem:[#allocation5 + $0x22c] ss:$16 sps:$4 sm:$0xff]   ;;  %v4515_v17 = vld [vmem:[#allocation5 + $0x644] ss:$16 sps:$4 sm:$0xff]  }
  0xcc   :  { %2607 = vmatprep.subr.bf16.mxu0 %v4422_v16  ;;  %v4510_v16 = vld [vmem:[#allocation5 + $0x228] ss:$16 sps:$4 sm:$0xff]  }
  0xce   :  { %2780 = vmatpush1.bf16.msra.mxu1 %v4423_v19  ;;  %v5351_v19 = vld [vmem:[#allocation2 + $0x1c] ss:$48 sps:$4 sm:$0xff]  }
  0xcf   :  { %2608 = vmatpush1.bf16.msra.mxu0 %v4420_v18  ;;  %2781 = vmatprep.subr.bf16.mxu1 %v4431_v21  ;;  %v4518_v18 = vld [vmem:[#allocation5 + $0x24c] ss:$16 sps:$4 sm:$0xff]   ;;  %v4516_v21 = vld [vmem:[#allocation5 + $0x248] ss:$16 sps:$4 sm:$0xff]  }
  0xd0   :  { %2609 = vmatprep.subr.bf16.mxu0 %v4428_v20  ;;  %v4513_v20 = vld [vmem:[#allocation5 + $0x640] ss:$16 sps:$4 sm:$0xff]  }
  0xd2   :  { %2782 = vmatpush1.bf16.msra.mxu1 %v4429_v23  ;;  %v4519_v23 = vld [vmem:[#allocation5 + $0x660] ss:$16 sps:$4 sm:$0xff]  }
  0xd3   :  { %2610 = vmatpush1.bf16.msra.mxu0 %v4426_v22  ;;  %2783 = vmatprep.subr.bf16.mxu1 %v4437_v25  ;;  %v4521_v22 = vld [vmem:[#allocation5 + $0x664] ss:$16 sps:$4 sm:$0xff]  }
  0xd4   :  { %2611 = vmatprep.subr.bf16.mxu0 %v4434_v24  ;;  %v4522_v24 = vld [vmem:[#allocation5 + $0x268] ss:$16 sps:$4 sm:$0xff]   ;;  %v4527_v25 = vld [vmem:[#allocation5 + $0x684] ss:$16 sps:$4 sm:$0xff]  }
  0xd6   :  { %2784 = vmatpush1.bf16.msra.mxu1 %v4435_v27  ;;  %v4525_v27 = vld [vmem:[#allocation5 + $0x680] ss:$16 sps:$4 sm:$0xff]  }
  0xd7   :  { %2612 = vmatpush1.bf16.msra.mxu0 %v4432_v26  ;;  %2785 = vmatprep.subr.bf16.mxu1 %v4443_v29  ;;  %v4530_v26 = vld [vmem:[#allocation5 + $0x28c] ss:$16 sps:$4 sm:$0xff]  }
  0xd8   :  { %2613 = vmatprep.subr.bf16.mxu0 %v4440_v28  ;;  %v4533_v28 = vld [vmem:[#allocation5 + $0x6a4] ss:$16 sps:$4 sm:$0xff]   ;;  %v4536_v29 = vld [vmem:[#allocation5 + $0x2ac] ss:$16 sps:$4 sm:$0xff]  }
  0xda   :  { %2786 = vmatpush1.bf16.msra.mxu1 %v4441_v31  ;;  %v4534_v31 = vld [vmem:[#allocation5 + $0x2a8] ss:$16 sps:$4 sm:$0xff]  }
  0xdb   :  { %2614 = vmatpush1.bf16.msra.mxu0 %v4438_v30  ;;  %2787 = vmatprep.subr.bf16.mxu1 %v4449_v33  ;;  %v4531_v30 = vld [vmem:[#allocation5 + $0x6a0] ss:$16 sps:$4 sm:$0xff]   ;;  %v4542_v33 = vld [vmem:[#allocation5 + $0x2cc] ss:$16 sps:$4 sm:$0xff]  }
  0xdc   :  { %2615 = vmatprep.subr.bf16.mxu0 %v4446_v32  ;;  %v4539_v32 = vld [vmem:[#allocation5 + $0x6c4] ss:$16 sps:$4 sm:$0xff]  }
  0xde   :  { %2788 = vmatpush1.bf16.msra.mxu1 %v4447_v36  ;;  %v4540_v36 = vld [vmem:[#allocation5 + $0x2c8] ss:$16 sps:$4 sm:$0xff]  }
  0xdf   :  { %2616 = vmatpush1.bf16.msra.mxu0 %v4444_v35  ;;  %2789 = vmatprep.subr.bf16.mxu1 %v4455_v38  ;;  %v4537_v35 = vld [vmem:[#allocation5 + $0x6c0] ss:$16 sps:$4 sm:$0xff]   ;;  %v4548_v38 = vld [vmem:[#allocation5 + $0x2ec] ss:$16 sps:$4 sm:$0xff]  }
  0xe0   :  { %2617 = vmatprep.subr.bf16.mxu0 %v4452_v37  ;;  %v4545_v37 = vld [vmem:[#allocation5 + $0x6e4] ss:$16 sps:$4 sm:$0xff]  }
  0xe2   :  { %2790 = vmatpush1.bf16.msra.mxu1 %v4453_v40  ;;  %v4546_v40 = vld [vmem:[#allocation5 + $0x2e8] ss:$16 sps:$4 sm:$0xff]  }
  0xe3   :  { %2618 = vmatpush1.bf16.msra.mxu0 %v4450_v39  ;;  %2791 = vmatprep.subr.bf16.mxu1 %v4461_v42  ;;  %v4543_v39 = vld [vmem:[#allocation5 + $0x6e0] ss:$16 sps:$4 sm:$0xff]   ;;  %v4554_v42 = vld [vmem:[#allocation5 + $0x30c] ss:$16 sps:$4 sm:$0xff]  }
  0xe4   :  { %2619 = vmatprep.subr.bf16.mxu0 %v4458_v41  ;;  %v4551_v41 = vld [vmem:[#allocation5 + $0x704] ss:$16 sps:$4 sm:$0xff]  }
  0xe6   :  { %2792 = vmatpush1.bf16.msra.mxu1 %v4459_v44  ;;  %v4552_v44 = vld [vmem:[#allocation5 + $0x308] ss:$16 sps:$4 sm:$0xff]  }
  0xe7   :  { %2620 = vmatpush1.bf16.msra.mxu0 %v4456_v43  ;;  %2793 = vmatprep.subr.bf16.mxu1 %v4467_v46  ;;  %v4549_v43 = vld [vmem:[#allocation5 + $0x700] ss:$16 sps:$4 sm:$0xff]   ;;  %v4560_v46 = vld [vmem:[#allocation5 + $0x32c] ss:$16 sps:$4 sm:$0xff]  }
  0xe8   :  { %2621 = vmatprep.subr.bf16.mxu0 %v4464_v45  ;;  %v4557_v45 = vld [vmem:[#allocation5 + $0x724] ss:$16 sps:$4 sm:$0xff]  }
  0xea   :  { %2794 = vmatpush1.bf16.msra.mxu1 %v4465_v48  ;;  %v4558_v48 = vld [vmem:[#allocation5 + $0x328] ss:$16 sps:$4 sm:$0xff]  }
  0xeb   :  { %2622 = vmatpush1.bf16.msra.mxu0 %v4462_v47  ;;  %2795 = vmatprep.subr.bf16.mxu1 %v4473_v50  ;;  %v4555_v47 = vld [vmem:[#allocation5 + $0x720] ss:$16 sps:$4 sm:$0xff]   ;;  %v4566_v50 = vld [vmem:[#allocation5 + $0x34c] ss:$16 sps:$4 sm:$0xff]  }
  0xec   :  { %2623 = vmatprep.subr.bf16.mxu0 %v4470_v49  ;;  %v4563_v49 = vld [vmem:[#allocation5 + $0x744] ss:$16 sps:$4 sm:$0xff]  }
  0xee   :  { %2796 = vmatpush1.bf16.msra.mxu1 %v4471_v53  ;;  %v4564_v53 = vld [vmem:[#allocation5 + $0x348] ss:$16 sps:$4 sm:$0xff]  }
  0xef   :  { %2624 = vmatpush1.bf16.msra.mxu0 %v4468_v52  ;;  %2797 = vmatprep.subr.bf16.mxu1 %v4479_v55  ;;  %v4561_v52 = vld [vmem:[#allocation5 + $0x740] ss:$16 sps:$4 sm:$0xff]   ;;  %v4572_v55 = vld [vmem:[#allocation5 + $0x36c] ss:$16 sps:$4 sm:$0xff]  }
  0xf0   :  { %2625 = vmatprep.subr.bf16.mxu0 %v4476_v54  ;;  %v4569_v54 = vld [vmem:[#allocation5 + $0x764] ss:$16 sps:$4 sm:$0xff]  }
  0xf2   :  { %2798 = vmatpush1.bf16.msra.mxu1 %v4477_v57  ;;  %v4570_v57 = vld [vmem:[#allocation5 + $0x368] ss:$16 sps:$4 sm:$0xff]  }
  0xf3   :  { %2626 = vmatpush1.bf16.msra.mxu0 %v4474_v56  ;;  %2799 = vmatprep.subr.bf16.mxu1 %v4485_v59  ;;  %v4567_v56 = vld [vmem:[#allocation5 + $0x760] ss:$16 sps:$4 sm:$0xff]   ;;  %v4578_v59 = vld [vmem:[#allocation5 + $0x38c] ss:$16 sps:$4 sm:$0xff]  }
  0xf4   :  { %2627 = vmatprep.subr.bf16.mxu0 %v4482_v58  ;;  %v4575_v58 = vld [vmem:[#allocation5 + $0x784] ss:$16 sps:$4 sm:$0xff]  }
  0xf6   :  { %2800 = vmatpush1.bf16.msra.mxu1 %v4483_v61  ;;  %v4576_v61 = vld [vmem:[#allocation5 + $0x388] ss:$16 sps:$4 sm:$0xff]  }
  0xf7   :  { %2628 = vmatpush1.bf16.msra.mxu0 %v4480_v60  ;;  %2801 = vmatprep.subr.bf16.mxu1 %v4491_v63  ;;  %v4573_v60 = vld [vmem:[#allocation5 + $0x780] ss:$16 sps:$4 sm:$0xff]   ;;  %v4584_v63 = vld [vmem:[#allocation5 + $0x3ac] ss:$16 sps:$4 sm:$0xff]  }
  0xf8   :  { %2629 = vmatprep.subr.bf16.mxu0 %v4488_v62  ;;  %v4581_v62 = vld [vmem:[#allocation5 + $0x7a4] ss:$16 sps:$4 sm:$0xff]  }
  0xfa   :  { %2802 = vmatpush1.bf16.msra.mxu1 %v4489_v1  ;;  %v4582_v1 = vld [vmem:[#allocation5 + $0x3a8] ss:$16 sps:$4 sm:$0xff]  }
  0xfb   :  { %2630 = vmatpush1.bf16.msra.mxu0 %v4486_v0  ;;  %2803 = vmatprep.subr.bf16.mxu1 %v4497_v3  ;;  %v4579_v0 = vld [vmem:[#allocation5 + $0x7a0] ss:$16 sps:$4 sm:$0xff]   ;;  %v4590_v3 = vld [vmem:[#allocation5 + $0x3cc] ss:$16 sps:$4 sm:$0xff]  }
  0xfc   :  { %2631 = vmatprep.subr.bf16.mxu0 %v4494_v2  ;;  %v4587_v2 = vld [vmem:[#allocation5 + $0x7c4] ss:$16 sps:$4 sm:$0xff]  }
  0xfe   :  { %2804 = vmatpush1.bf16.msra.mxu1 %v4495_v7  ;;  %v4588_v7 = vld [vmem:[#allocation5 + $0x3c8] ss:$16 sps:$4 sm:$0xff]  }
  0xff   :  { %2632 = vmatpush1.bf16.msra.mxu0 %v4492_v6  ;;  %2816 = vmatprep.subr.bf16.mxu1 %v4506_v9  ;;  %v4585_v6 = vld [vmem:[#allocation5 + $0x7c0] ss:$16 sps:$4 sm:$0xff]   ;;  %v4596_v9 = vld [vmem:[#allocation5 + $0x3ec] ss:$16 sps:$4 sm:$0xff]  }
 0x100   :  { %2644 = vmatprep.subr.bf16.mxu0 %v4503_v8  ;;  %v4593_v8 = vld [vmem:[#allocation5 + $0x7e4] ss:$16 sps:$4 sm:$0xff]  }
 0x101   :  { %2806 = vmatmul.mubr.bf16.vlgmr.msra.gmra.mrb[4].mxu1 %v5338_v4  ;;  %v4524_v4 = vld [vmem:[#allocation5 + $0x26c] ss:$16 sps:$4 sm:$0xff]  }
 0x102   :  { %2634 = vmatmul.mubr.bf16.vlgmr.msra.gmra.mrb[0].mxu0 %v5347_v10  ;;  %2817 = vmatpush1.bf16.msra.mxu1 %v4504_v12  ;;  %v4594_v12 = vld [vmem:[#allocation5 + $0x3e8] ss:$16 sps:$4 sm:$0xff]  }
 0x103   :  { %2645 = vmatpush1.bf16.msra.mxu0 %v4501_v11  ;;  %2818 = vmatprep.subr.bf16.mxu1 %v4512_v14  ;;  %v4591_v11 = vld [vmem:[#allocation5 + $0x7e0] ss:$16 sps:$4 sm:$0xff]   ;;  %v4605_v14 = vld [vmem:[#allocation5 + $0x40c] ss:$16 sps:$4 sm:$0xff]  }
 0x104   :  { %2646 = vmatprep.subr.bf16.mxu0 %v4509_v13  ;;  %2848 = vmatprep.mubr.bf16.mxu1 %v5335_v51  ;;  %v4528_v51 = vld [vmem:[#allocation5 + $0x288] ss:$16 sps:$4 sm:$0xff]   ;;  %v4602_v13 = vld [vmem:[#allocation5 + $0x804] ss:$16 sps:$4 sm:$0xff]  }
 0x105   :  { %2676 = vmatprep.mubr.bf16.mxu0 %v5351_v19 }
 0x106   :  { %2819 = vmatpush1.bf16.msra.mxu1 %v4510_v16  ;;  %v4600_v16 = vld [vmem:[#allocation5 + $0x800] ss:$16 sps:$4 sm:$0xff]  }
 0x107   :  { %2647 = vmatpush1.bf16.msra.mxu0 %v4507_v15  ;;  %2820 = vmatprep.subr.bf16.mxu1 %v4518_v18  ;;  %v5355_v15 = vld [vmem:[#allocation2 + $0x18] ss:$48 sps:$4 sm:$0xff]   ;;  %v4608_v18 = vld [vmem:[#allocation5 + $0x824] ss:$16 sps:$4 sm:$0xff]  }
 0x108   :  { %2648 = vmatprep.subr.bf16.mxu0 %v4515_v17  ;;  %v4603_v17 = vld [vmem:[#allocation5 + $0x408] ss:$16 sps:$4 sm:$0xff]  }
 0x10a   :  { %2821 = vmatpush1.bf16.msra.mxu1 %v4516_v21  ;;  %v5357_v21 = vld [vmem:[#allocation2 + $0x24] ss:$48 sps:$4 sm:$0xff]  }
 0x10b   :  { %2649 = vmatpush1.bf16.msra.mxu0 %v4513_v20  ;;  %2822 = vmatprep.subr.bf16.mxu1 %v4524_v4  ;;  %v4611_v20 = vld [vmem:[#allocation5 + $0x42c] ss:$16 sps:$4 sm:$0xff]   ;;  %v4609_v4 = vld [vmem:[#allocation5 + $0x428] ss:$16 sps:$4 sm:$0xff]  }
 0x10c   :  { %2650 = vmatprep.subr.bf16.mxu0 %v4521_v22  ;;  %v4606_v22 = vld [vmem:[#allocation5 + $0x820] ss:$16 sps:$4 sm:$0xff]  }
 0x10e   :  { %2823 = vmatpush1.bf16.msra.mxu1 %v4522_v24  ;;  %v4617_v24 = vld [vmem:[#allocation5 + $0x44c] ss:$16 sps:$4 sm:$0xff]  }
 0x10f   :  { %2651 = vmatpush1.bf16.msra.mxu0 %v4519_v23  ;;  %2824 = vmatprep.subr.bf16.mxu1 %v4530_v26  ;;  %v4614_v23 = vld [vmem:[#allocation5 + $0x844] ss:$16 sps:$4 sm:$0xff]   ;;  %v4615_v26 = vld [vmem:[#allocation5 + $0x448] ss:$16 sps:$4 sm:$0xff]  }
 0x110   :  { %2652 = vmatprep.subr.bf16.mxu0 %v4527_v25  ;;  %v4612_v25 = vld [vmem:[#allocation5 + $0x840] ss:$16 sps:$4 sm:$0xff]  }
 0x112   :  { %2825 = vmatpush1.bf16.msra.mxu1 %v4528_v51  ;;  %v4618_v51 = vld [vmem:[#allocation5 + $0x860] ss:$16 sps:$4 sm:$0xff]  }
 0x113   :  { %2653 = vmatpush1.bf16.msra.mxu0 %v4525_v27  ;;  %2826 = vmatprep.subr.bf16.mxu1 %v4536_v29  ;;  %v4620_v27 = vld [vmem:[#allocation5 + $0x864] ss:$16 sps:$4 sm:$0xff]  }
 0x114   :  { %2654 = vmatprep.subr.bf16.mxu0 %v4533_v28  ;;  %v4621_v28 = vld [vmem:[#allocation5 + $0x468] ss:$16 sps:$4 sm:$0xff]   ;;  %v4626_v29 = vld [vmem:[#allocation5 + $0x884] ss:$16 sps:$4 sm:$0xff]  }
 0x116   :  { %2827 = vmatpush1.bf16.msra.mxu1 %v4534_v31  ;;  %v4624_v31 = vld [vmem:[#allocation5 + $0x880] ss:$16 sps:$4 sm:$0xff]  }
 0x117   :  { %2655 = vmatpush1.bf16.msra.mxu0 %v4531_v30  ;;  %2828 = vmatprep.subr.bf16.mxu1 %v4542_v33  ;;  %v4629_v30 = vld [vmem:[#allocation5 + $0x48c] ss:$16 sps:$4 sm:$0xff]  }
 0x118   :  { %2656 = vmatprep.subr.bf16.mxu0 %v4539_v32  ;;  %v4632_v32 = vld [vmem:[#allocation5 + $0x8a4] ss:$16 sps:$4 sm:$0xff]   ;;  %v4635_v33 = vld [vmem:[#allocation5 + $0x4ac] ss:$16 sps:$4 sm:$0xff]  }
 0x11a   :  { %2829 = vmatpush1.bf16.msra.mxu1 %v4540_v36  ;;  %v4633_v36 = vld [vmem:[#allocation5 + $0x4a8] ss:$16 sps:$4 sm:$0xff]  }
 0x11b   :  { %2657 = vmatpush1.bf16.msra.mxu0 %v4537_v35  ;;  %2830 = vmatprep.subr.bf16.mxu1 %v4548_v38  ;;  %v4630_v35 = vld [vmem:[#allocation5 + $0x8a0] ss:$16 sps:$4 sm:$0xff]   ;;  %v4641_v38 = vld [vmem:[#allocation5 + $0x4cc] ss:$16 sps:$4 sm:$0xff]  }
 0x11c   :  { %2658 = vmatprep.subr.bf16.mxu0 %v4545_v37  ;;  %v4638_v37 = vld [vmem:[#allocation5 + $0x8c4] ss:$16 sps:$4 sm:$0xff]  }
 0x11e   :  { %2831 = vmatpush1.bf16.msra.mxu1 %v4546_v40  ;;  %v4639_v40 = vld [vmem:[#allocation5 + $0x4c8] ss:$16 sps:$4 sm:$0xff]  }
 0x11f   :  { %2659 = vmatpush1.bf16.msra.mxu0 %v4543_v39  ;;  %2832 = vmatprep.subr.bf16.mxu1 %v4554_v42  ;;  %v4636_v39 = vld [vmem:[#allocation5 + $0x8c0] ss:$16 sps:$4 sm:$0xff]   ;;  %v4647_v42 = vld [vmem:[#allocation5 + $0x4ec] ss:$16 sps:$4 sm:$0xff]  }
 0x120   :  { %2660 = vmatprep.subr.bf16.mxu0 %v4551_v41  ;;  %v4644_v41 = vld [vmem:[#allocation5 + $0x8e4] ss:$16 sps:$4 sm:$0xff]  }
 0x122   :  { %2833 = vmatpush1.bf16.msra.mxu1 %v4552_v44  ;;  %v4645_v44 = vld [vmem:[#allocation5 + $0x4e8] ss:$16 sps:$4 sm:$0xff]  }
 0x123   :  { %2661 = vmatpush1.bf16.msra.mxu0 %v4549_v43  ;;  %2834 = vmatprep.subr.bf16.mxu1 %v4560_v46  ;;  %v4642_v43 = vld [vmem:[#allocation5 + $0x8e0] ss:$16 sps:$4 sm:$0xff]   ;;  %v4653_v46 = vld [vmem:[#allocation5 + $0x50c] ss:$16 sps:$4 sm:$0xff]  }
 0x124   :  { %2662 = vmatprep.subr.bf16.mxu0 %v4557_v45  ;;  %v4650_v45 = vld [vmem:[#allocation5 + $0x904] ss:$16 sps:$4 sm:$0xff]  }
 0x126   :  { %2835 = vmatpush1.bf16.msra.mxu1 %v4558_v48  ;;  %v4651_v48 = vld [vmem:[#allocation5 + $0x508] ss:$16 sps:$4 sm:$0xff]  }
 0x127   :  { %2663 = vmatpush1.bf16.msra.mxu0 %v4555_v47  ;;  %2836 = vmatprep.subr.bf16.mxu1 %v4566_v50  ;;  %v4648_v47 = vld [vmem:[#allocation5 + $0x900] ss:$16 sps:$4 sm:$0xff]   ;;  %v4659_v50 = vld [vmem:[#allocation5 + $0x52c] ss:$16 sps:$4 sm:$0xff]  }
 0x128   :  { %2664 = vmatprep.subr.bf16.mxu0 %v4563_v49  ;;  %v4656_v49 = vld [vmem:[#allocation5 + $0x924] ss:$16 sps:$4 sm:$0xff]  }
 0x12a   :  { %2837 = vmatpush1.bf16.msra.mxu1 %v4564_v53  ;;  %v4657_v53 = vld [vmem:[#allocation5 + $0x528] ss:$16 sps:$4 sm:$0xff]  }
 0x12b   :  { %2665 = vmatpush1.bf16.msra.mxu0 %v4561_v52  ;;  %2838 = vmatprep.subr.bf16.mxu1 %v4572_v55  ;;  %v4654_v52 = vld [vmem:[#allocation5 + $0x920] ss:$16 sps:$4 sm:$0xff]   ;;  %v4665_v55 = vld [vmem:[#allocation5 + $0x54c] ss:$16 sps:$4 sm:$0xff]  }
 0x12c   :  { %2666 = vmatprep.subr.bf16.mxu0 %v4569_v54  ;;  %v4662_v54 = vld [vmem:[#allocation5 + $0x944] ss:$16 sps:$4 sm:$0xff]  }
 0x12e   :  { %2839 = vmatpush1.bf16.msra.mxu1 %v4570_v57  ;;  %v4663_v57 = vld [vmem:[#allocation5 + $0x548] ss:$16 sps:$4 sm:$0xff]  }
 0x12f   :  { %2667 = vmatpush1.bf16.msra.mxu0 %v4567_v56  ;;  %2840 = vmatprep.subr.bf16.mxu1 %v4578_v59  ;;  %v4660_v56 = vld [vmem:[#allocation5 + $0x940] ss:$16 sps:$4 sm:$0xff]   ;;  %v4671_v59 = vld [vmem:[#allocation5 + $0x56c] ss:$16 sps:$4 sm:$0xff]  }
 0x130   :  { %2668 = vmatprep.subr.bf16.mxu0 %v4575_v58  ;;  %v4668_v58 = vld [vmem:[#allocation5 + $0x964] ss:$16 sps:$4 sm:$0xff]  }
 0x132   :  { %2841 = vmatpush1.bf16.msra.mxu1 %v4576_v61  ;;  %v4669_v61 = vld [vmem:[#allocation5 + $0x568] ss:$16 sps:$4 sm:$0xff]  }
 0x133   :  { %2669 = vmatpush1.bf16.msra.mxu0 %v4573_v60  ;;  %2842 = vmatprep.subr.bf16.mxu1 %v4584_v63  ;;  %v4666_v60 = vld [vmem:[#allocation5 + $0x960] ss:$16 sps:$4 sm:$0xff]   ;;  %v4677_v63 = vld [vmem:[#allocation5 + $0x58c] ss:$16 sps:$4 sm:$0xff]  }
 0x134   :  { %2670 = vmatprep.subr.bf16.mxu0 %v4581_v62  ;;  %v4674_v62 = vld [vmem:[#allocation5 + $0x984] ss:$16 sps:$4 sm:$0xff]  }
 0x136   :  { %2843 = vmatpush1.bf16.msra.mxu1 %v4582_v1  ;;  %v4675_v1 = vld [vmem:[#allocation5 + $0x588] ss:$16 sps:$4 sm:$0xff]  }
 0x137   :  { %2671 = vmatpush1.bf16.msra.mxu0 %v4579_v0  ;;  %2844 = vmatprep.subr.bf16.mxu1 %v4590_v3  ;;  %v4672_v0 = vld [vmem:[#allocation5 + $0x980] ss:$16 sps:$4 sm:$0xff]   ;;  %v4683_v3 = vld [vmem:[#allocation5 + $0x5ac] ss:$16 sps:$4 sm:$0xff]  }
 0x138   :  { %2672 = vmatprep.subr.bf16.mxu0 %v4587_v2  ;;  %v4680_v2 = vld [vmem:[#allocation5 + $0x9a4] ss:$16 sps:$4 sm:$0xff]  }
 0x13a   :  { %2845 = vmatpush1.bf16.msra.mxu1 %v4588_v7  ;;  %v4681_v7 = vld [vmem:[#allocation5 + $0x5a8] ss:$16 sps:$4 sm:$0xff]  }
 0x13b   :  { %2673 = vmatpush1.bf16.msra.mxu0 %v4585_v6  ;;  %2846 = vmatprep.subr.bf16.mxu1 %v4596_v9  ;;  %v4678_v6 = vld [vmem:[#allocation5 + $0x9a0] ss:$16 sps:$4 sm:$0xff]   ;;  %v4689_v9 = vld [vmem:[#allocation5 + $0x5cc] ss:$16 sps:$4 sm:$0xff]  }
 0x13c   :  { %2674 = vmatprep.subr.bf16.mxu0 %v4593_v8  ;;  %v4686_v8 = vld [vmem:[#allocation5 + $0x9c4] ss:$16 sps:$4 sm:$0xff]  }
 0x13e   :  { %2847 = vmatpush1.bf16.msra.mxu1 %v4594_v12  ;;  %v4687_v12 = vld [vmem:[#allocation5 + $0x5c8] ss:$16 sps:$4 sm:$0xff]  }
 0x13f   :  { %2675 = vmatpush1.bf16.msra.mxu0 %v4591_v11  ;;  %2859 = vmatprep.subr.bf16.mxu1 %v4605_v14  ;;  %v4684_v11 = vld [vmem:[#allocation5 + $0x9c0] ss:$16 sps:$4 sm:$0xff]   ;;  %v4695_v14 = vld [vmem:[#allocation5 + $0x5ec] ss:$16 sps:$4 sm:$0xff]  }
 0x140   :  { %2687 = vmatprep.subr.bf16.mxu0 %v4602_v13  ;;  %v4692_v13 = vld [vmem:[#allocation5 + $0x9e4] ss:$16 sps:$4 sm:$0xff]  }
 0x141   :  { %2849 = vmatmul.mubr.bf16.vlgmr.msra.gmra.mrb[4].mxu1 %v5340_v5  ;;  %v4623_v5 = vld [vmem:[#allocation5 + $0x46c] ss:$16 sps:$4 sm:$0xff]  }
 0x142   :  { %2677 = vmatmul.mubr.bf16.vlgmr.msra.gmra.mrb[0].mxu0 %v5355_v15  ;;  %2860 = vmatpush1.bf16.msra.mxu1 %v4603_v17  ;;  %v4693_v17 = vld [vmem:[#allocation5 + $0x5e8] ss:$16 sps:$4 sm:$0xff]  }
 0x143   :  { %2688 = vmatpush1.bf16.msra.mxu0 %v4600_v16  ;;  %2861 = vmatprep.subr.bf16.mxu1 %v4611_v20  ;;  %v4690_v16 = vld [vmem:[#allocation5 + $0x9e0] ss:$16 sps:$4 sm:$0xff]   ;;  %v4704_v20 = vld [vmem:[#allocation5 + $0x60c] ss:$16 sps:$4 sm:$0xff]  }
 0x144   :  { %2689 = vmatprep.subr.bf16.mxu0 %v4608_v18  ;;  %2719 = vmatprep.mubr.bf16.mxu0 %v5357_v21  ;;  %v4701_v18 = vld [vmem:[#allocation5 + $0xa04] ss:$16 sps:$4 sm:$0xff]  }
 0x145   :  { %2891 = vmatprep.mubr.bf16.mxu1 %v5344_v34  ;;  %v4627_v34 = vld [vmem:[#allocation5 + $0x488] ss:$16 sps:$4 sm:$0xff]  }
 0x146   :  { %2862 = vmatpush1.bf16.msra.mxu1 %v4609_v4  ;;  %v4699_v4 = vld [vmem:[#allocation5 + $0xa00] ss:$16 sps:$4 sm:$0xff]  }
 0x147   :  { %2690 = vmatpush1.bf16.msra.mxu0 %v4606_v22  ;;  %2863 = vmatprep.subr.bf16.mxu1 %v4617_v24  ;;  %v5363_v22 = vld [vmem:[#allocation2 + $0x20] ss:$48 sps:$4 sm:$0xff]   ;;  %v4707_v24 = vld [vmem:[#allocation5 + $0xa24] ss:$16 sps:$4 sm:$0xff]  }
 0x148   :  { %2691 = vmatprep.subr.bf16.mxu0 %v4614_v23  ;;  %v4702_v23 = vld [vmem:[#allocation5 + $0x608] ss:$16 sps:$4 sm:$0xff]  }
 0x14a   :  { %2864 = vmatpush1.bf16.msra.mxu1 %v4615_v26  ;;  %v5365_v26 = vld [vmem:[#allocation2 + $0x2c] ss:$48 sps:$4 sm:$0xff]  }
 0x14b   :  { %2692 = vmatpush1.bf16.msra.mxu0 %v4612_v25  ;;  %2865 = vmatprep.subr.bf16.mxu1 %v4623_v5  ;;  %v4710_v25 = vld [vmem:[#allocation5 + $0x62c] ss:$16 sps:$4 sm:$0xff]   ;;  %v4708_v5 = vld [vmem:[#allocation5 + $0x628] ss:$16 sps:$4 sm:$0xff]  }
 0x14c   :  { %2693 = vmatprep.subr.bf16.mxu0 %v4620_v27  ;;  %v4705_v27 = vld [vmem:[#allocation5 + $0xa20] ss:$16 sps:$4 sm:$0xff]  }
 0x14e   :  { %2866 = vmatpush1.bf16.msra.mxu1 %v4621_v28  ;;  %v4716_v28 = vld [vmem:[#allocation5 + $0x64c] ss:$16 sps:$4 sm:$0xff]  }
 0x14f   :  { %2694 = vmatpush1.bf16.msra.mxu0 %v4618_v51  ;;  %2867 = vmatprep.subr.bf16.mxu1 %v4629_v30  ;;  %v4713_v51 = vld [vmem:[#allocation5 + $0xa44] ss:$16 sps:$4 sm:$0xff]   ;;  %v4714_v30 = vld [vmem:[#allocation5 + $0x648] ss:$16 sps:$4 sm:$0xff]  }
 0x150   :  { %2695 = vmatprep.subr.bf16.mxu0 %v4626_v29  ;;  %v4711_v29 = vld [vmem:[#allocation5 + $0xa40] ss:$16 sps:$4 sm:$0xff]  }
 0x152   :  { %2868 = vmatpush1.bf16.msra.mxu1 %v4627_v34  ;;  %v4722_v34 = vld [vmem:[#allocation5 + $0x66c] ss:$16 sps:$4 sm:$0xff]  }
 0x153   :  { %2696 = vmatpush1.bf16.msra.mxu0 %v4624_v31  ;;  %2869 = vmatprep.subr.bf16.mxu1 %v4635_v33  ;;  %v4719_v31 = vld [vmem:[#allocation5 + $0xa64] ss:$16 sps:$4 sm:$0xff]  }
 0x154   :  { %2697 = vmatprep.subr.bf16.mxu0 %v4632_v32  ;;  %v4717_v32 = vld [vmem:[#allocation5 + $0xa60] ss:$16 sps:$4 sm:$0xff]   ;;  %v4725_v33 = vld [vmem:[#allocation5 + $0xa84] ss:$16 sps:$4 sm:$0xff]  }
 0x156   :  { %2870 = vmatpush1.bf16.msra.mxu1 %v4633_v36  ;;  %v4723_v36 = vld [vmem:[#allocation5 + $0xa80] ss:$16 sps:$4 sm:$0xff]  }
 0x157   :  { %2698 = vmatpush1.bf16.msra.mxu0 %v4630_v35  ;;  %2871 = vmatprep.subr.bf16.mxu1 %v4641_v38  ;;  %v4728_v35 = vld [vmem:[#allocation5 + $0x68c] ss:$16 sps:$4 sm:$0xff]   ;;  %v4731_v38 = vld [vmem:[#allocation5 + $0xaa4] ss:$16 sps:$4 sm:$0xff]  }
 0x158   :  { %2699 = vmatprep.subr.bf16.mxu0 %v4638_v37  ;;  %v4726_v37 = vld [vmem:[#allocation5 + $0x688] ss:$16 sps:$4 sm:$0xff]  }
 0x15a   :  { %2872 = vmatpush1.bf16.msra.mxu1 %v4639_v40  ;;  %v4732_v40 = vld [vmem:[#allocation5 + $0x6a8] ss:$16 sps:$4 sm:$0xff]  }
 0x15b   :  { %2700 = vmatpush1.bf16.msra.mxu0 %v4636_v39  ;;  %2873 = vmatprep.subr.bf16.mxu1 %v4647_v42  ;;  %v4729_v39 = vld [vmem:[#allocation5 + $0xaa0] ss:$16 sps:$4 sm:$0xff]   ;;  %v4740_v42 = vld [vmem:[#allocation5 + $0x6cc] ss:$16 sps:$4 sm:$0xff]  }
 0x15c   :  { %2701 = vmatprep.subr.bf16.mxu0 %v4644_v41  ;;  %v4737_v41 = vld [vmem:[#allocation5 + $0xac4] ss:$16 sps:$4 sm:$0xff]  }
 0x15e   :  { %2874 = vmatpush1.bf16.msra.mxu1 %v4645_v44  ;;  %v4735_v44 = vld [vmem:[#allocation5 + $0xac0] ss:$16 sps:$4 sm:$0xff]  }
 0x15f   :  { %2702 = vmatpush1.bf16.msra.mxu0 %v4642_v43  ;;  %2875 = vmatprep.subr.bf16.mxu1 %v4653_v46 }
 0x160   :  { %2703 = vmatprep.subr.bf16.mxu0 %v4650_v45  ;;  %v4738_v45 = vld [vmem:[#allocation5 + $0x6c8] ss:$16 sps:$4 sm:$0xff]  }
 0x162   :  { %2876 = vmatpush1.bf16.msra.mxu1 %v4651_v48  ;;  %v4743_v48 = vld [vmem:[#allocation5 + $0xae4] ss:$16 sps:$4 sm:$0xff]  }
 0x163   :  { %2704 = vmatpush1.bf16.msra.mxu0 %v4648_v47  ;;  %2877 = vmatprep.subr.bf16.mxu1 %v4659_v50 }
 0x164   :  { %2705 = vmatprep.subr.bf16.mxu0 %v4656_v49  ;;  %v4746_v49 = vld [vmem:[#allocation5 + $0x6ec] ss:$16 sps:$4 sm:$0xff]  }
 0x166   :  { %2878 = vmatpush1.bf16.msra.mxu1 %v4657_v53  ;;  %v4744_v53 = vld [vmem:[#allocation5 + $0x6e8] ss:$16 sps:$4 sm:$0xff]  }
 0x167   :  { %2706 = vmatpush1.bf16.msra.mxu0 %v4654_v52  ;;  %2879 = vmatprep.subr.bf16.mxu1 %v4665_v55  ;;  %v4741_v52 = vld [vmem:[#allocation5 + $0xae0] ss:$16 sps:$4 sm:$0xff]   ;;  %v4752_v55 = vld [vmem:[#allocation5 + $0x70c] ss:$16 sps:$4 sm:$0xff]  }
 0x168   :  { %2707 = vmatprep.subr.bf16.mxu0 %v4662_v54  ;;  %v4749_v54 = vld [vmem:[#allocation5 + $0xb04] ss:$16 sps:$4 sm:$0xff]  }
 0x16a   :  { %2880 = vmatpush1.bf16.msra.mxu1 %v4663_v57  ;;  %v4750_v57 = vld [vmem:[#allocation5 + $0x708] ss:$16 sps:$4 sm:$0xff]  }
 0x16b   :  { %2708 = vmatpush1.bf16.msra.mxu0 %v4660_v56  ;;  %2881 = vmatprep.subr.bf16.mxu1 %v4671_v59  ;;  %v4747_v56 = vld [vmem:[#allocation5 + $0xb00] ss:$16 sps:$4 sm:$0xff]   ;;  %v4758_v59 = vld [vmem:[#allocation5 + $0x72c] ss:$16 sps:$4 sm:$0xff]  }
 0x16c   :  { %2709 = vmatprep.subr.bf16.mxu0 %v4668_v58  ;;  %v4755_v58 = vld [vmem:[#allocation5 + $0xb24] ss:$16 sps:$4 sm:$0xff]  }
 0x16e   :  { %2882 = vmatpush1.bf16.msra.mxu1 %v4669_v61  ;;  %v4756_v61 = vld [vmem:[#allocation5 + $0x728] ss:$16 sps:$4 sm:$0xff]  }
 0x16f   :  { %2710 = vmatpush1.bf16.msra.mxu0 %v4666_v60  ;;  %2883 = vmatprep.subr.bf16.mxu1 %v4677_v63  ;;  %v4753_v60 = vld [vmem:[#allocation5 + $0xb20] ss:$16 sps:$4 sm:$0xff]   ;;  %v4764_v63 = vld [vmem:[#allocation5 + $0x74c] ss:$16 sps:$4 sm:$0xff]  }
 0x170   :  { %2711 = vmatprep.subr.bf16.mxu0 %v4674_v62  ;;  %v4761_v62 = vld [vmem:[#allocation5 + $0xb44] ss:$16 sps:$4 sm:$0xff]  }
 0x172   :  { %2884 = vmatpush1.bf16.msra.mxu1 %v4675_v1  ;;  %v4762_v1 = vld [vmem:[#allocation5 + $0x748] ss:$16 sps:$4 sm:$0xff]  }
 0x173   :  { %2712 = vmatpush1.bf16.msra.mxu0 %v4672_v0  ;;  %2885 = vmatprep.subr.bf16.mxu1 %v4683_v3  ;;  %v4759_v0 = vld [vmem:[#allocation5 + $0xb40] ss:$16 sps:$4 sm:$0xff]   ;;  %v4770_v3 = vld [vmem:[#allocation5 + $0x76c] ss:$16 sps:$4 sm:$0xff]  }
 0x174   :  { %2713 = vmatprep.subr.bf16.mxu0 %v4680_v2  ;;  %v4767_v2 = vld [vmem:[#allocation5 + $0xb64] ss:$16 sps:$4 sm:$0xff]  }
 0x176   :  { %2886 = vmatpush1.bf16.msra.mxu1 %v4681_v7  ;;  %v4768_v7 = vld [vmem:[#allocation5 + $0x768] ss:$16 sps:$4 sm:$0xff]  }
 0x177   :  { %2714 = vmatpush1.bf16.msra.mxu0 %v4678_v6  ;;  %2887 = vmatprep.subr.bf16.mxu1 %v4689_v9  ;;  %v4765_v6 = vld [vmem:[#allocation5 + $0xb60] ss:$16 sps:$4 sm:$0xff]   ;;  %v4776_v9 = vld [vmem:[#allocation5 + $0x78c] ss:$16 sps:$4 sm:$0xff]  }
 0x178   :  { %2715 = vmatprep.subr.bf16.mxu0 %v4686_v8  ;;  %v4773_v8 = vld [vmem:[#allocation5 + $0xb84] ss:$16 sps:$4 sm:$0xff]  }
 0x17a   :  { %2888 = vmatpush1.bf16.msra.mxu1 %v4687_v12  ;;  %v4774_v12 = vld [vmem:[#allocation5 + $0x788] ss:$16 sps:$4 sm:$0xff]  }
 0x17b   :  { %2716 = vmatpush1.bf16.msra.mxu0 %v4684_v11  ;;  %2889 = vmatprep.subr.bf16.mxu1 %v4695_v14  ;;  %v4771_v11 = vld [vmem:[#allocation5 + $0xb80] ss:$16 sps:$4 sm:$0xff]   ;;  %v4782_v14 = vld [vmem:[#allocation5 + $0x7ac] ss:$16 sps:$4 sm:$0xff]  }
 0x17c   :  { %2717 = vmatprep.subr.bf16.mxu0 %v4692_v13  ;;  %v4779_v13 = vld [vmem:[#allocation5 + $0xba4] ss:$16 sps:$4 sm:$0xff]  }
 0x17e   :  { %2890 = vmatpush1.bf16.msra.mxu1 %v4693_v17  ;;  %v4780_v17 = vld [vmem:[#allocation5 + $0x7a8] ss:$16 sps:$4 sm:$0xff]  }
 0x17f   :  { %2718 = vmatpush1.bf16.msra.mxu0 %v4690_v16  ;;  %2902 = vmatprep.subr.bf16.mxu1 %v4704_v20  ;;  %v4777_v16 = vld [vmem:[#allocation5 + $0xba0] ss:$16 sps:$4 sm:$0xff]   ;;  %v4788_v20 = vld [vmem:[#allocation5 + $0x7cc] ss:$16 sps:$4 sm:$0xff]  }
 0x180   :  { %2730 = vmatprep.subr.bf16.mxu0 %v4701_v18  ;;  %v4785_v18 = vld [vmem:[#allocation5 + $0xbc4] ss:$16 sps:$4 sm:$0xff]  }
 0x181   :  { %2892 = vmatmul.mubr.bf16.vlgmr.msra.gmra.mrb[4].mxu1 %v5347_v10  ;;  %v4720_v10 = vld [vmem:[#allocation5 + $0x668] ss:$16 sps:$4 sm:$0xff]  }
 0x182   :  { %2720 = vmatmul.mubr.bf16.vlgmr.msra.gmra.mrb[0].mxu0 %v5363_v22  ;;  %2903 = vmatpush1.bf16.msra.mxu1 %v4702_v23  ;;  %v4786_v23 = vld [vmem:[#allocation5 + $0x7c8] ss:$16 sps:$4 sm:$0xff]  }
 0x183   :  { %2731 = vmatpush1.bf16.msra.mxu0 %v4699_v4  ;;  %2904 = vmatprep.subr.bf16.mxu1 %v4710_v25  ;;  %v4783_v4 = vld [vmem:[#allocation5 + $0xbc0] ss:$16 sps:$4 sm:$0xff]   ;;  %v4794_v25 = vld [vmem:[#allocation5 + $0x7ec] ss:$16 sps:$4 sm:$0xff]  }
 0x184   :  { %2732 = vmatprep.subr.bf16.mxu0 %v4707_v24  ;;  %2762 = vmatprep.mubr.bf16.mxu0 %v5365_v26  ;;  %v4791_v24 = vld [vmem:[#allocation5 + $0xbe4] ss:$16 sps:$4 sm:$0xff]  }
 0x185   :  { %2934 = vmatprep.mubr.bf16.mxu1 %v5351_v19  ;;  %v4734_v19 = vld [vmem:[#allocation5 + $0x6ac] ss:$16 sps:$4 sm:$0xff]  }
 0x186   :  { %2905 = vmatpush1.bf16.msra.mxu1 %v4708_v5  ;;  %v4792_v5 = vld [vmem:[#allocation5 + $0x7e8] ss:$16 sps:$4 sm:$0xff]  }
 0x187   :  { %2733 = vmatpush1.bf16.msra.mxu0 %v4705_v27  ;;  %2906 = vmatprep.subr.bf16.mxu1 %v4716_v28  ;;  %v4789_v27 = vld [vmem:[#allocation5 + $0xbe0] ss:$16 sps:$4 sm:$0xff]   ;;  %v5379_v28 = vld [vmem:[#allocation2 + $0x28] ss:$48 sps:$4 sm:$0xff]  }
 0x188   :  { %2734 = vmatprep.subr.bf16.mxu0 %v4713_v51  ;;  %v4800_v51 = vld [vmem:[#allocation5 + $0x80c] ss:$16 sps:$4 sm:$0xff]  }
 0x18a   :  { %2907 = vmatpush1.bf16.msra.mxu1 %v4714_v30  ;;  %v4803_v30 = vld [vmem:[#allocation5 + $0x82c] ss:$16 sps:$4 sm:$0xff]  }
 0x18b   :  { %2735 = vmatpush1.bf16.msra.mxu0 %v4711_v29  ;;  %2908 = vmatprep.subr.bf16.mxu1 %v4722_v34  ;;  %v4798_v29 = vld [vmem:[#allocation5 + $0x808] ss:$16 sps:$4 sm:$0xff]  }
 0x18c   :  { %2736 = vmatprep.subr.bf16.mxu0 %v4719_v31  ;;  %v4894_v31 = vld [vmem:[#allocation8] ss:$8 sps:$4 sm:$0xff]   ;;  %v4896_v34 = vld [vmem:[#allocation8 + $0x4] ss:$8 sps:$4 sm:$0xff]  }
 0x18e   :  { %2909 = vmatpush1.bf16.msra.mxu1 %v4720_v10  ;;  %v4899_v10 = vld [vmem:[#allocation8 + $0x14] ss:$8 sps:$4 sm:$0xff]  }
 0x18f   :  { %2737 = vmatpush1.bf16.msra.mxu0 %v4717_v32  ;;  %2910 = vmatprep.subr.bf16.mxu1 %v4728_v35  ;;  %v4801_v32 = vld [vmem:[#allocation5 + $0x828] ss:$16 sps:$4 sm:$0xff]   ;;  %v4897_v35 = vld [vmem:[#allocation8 + $0x10] ss:$8 sps:$4 sm:$0xff]  }
 0x190   :  { %2738 = vmatprep.subr.bf16.mxu0 %v4725_v33  ;;  %v4806_v33 = vld [vmem:[#allocation5 + $0x84c] ss:$16 sps:$4 sm:$0xff]  }
 0x192   :  { %2911 = vmatpush1.bf16.msra.mxu1 %v4726_v37  ;;  %v4804_v37 = vld [vmem:[#allocation5 + $0x848] ss:$16 sps:$4 sm:$0xff]  }
 0x193   :  { %2739 = vmatpush1.bf16.msra.mxu0 %v4723_v36  ;;  %2912 = vmatprep.subr.bf16.mxu1 %v4734_v19  ;;  %v4902_v36 = vld [vmem:[#allocation8 + $0x24] ss:$8 sps:$4 sm:$0xff]   ;;  %v4905_v19 = vld [vmem:[#allocation8 + $0x34] ss:$8 sps:$4 sm:$0xff]  }
 0x194   :  { %2740 = vmatprep.subr.bf16.mxu0 %v4731_v38  ;;  %v5371_v43 = vpop.f32.mrb[0].mxu1  ;;  %v4809_v38 = vld [vmem:[#allocation5 + $0x86c] ss:$16 sps:$4 sm:$0xff]  }
 0x195   :  { %v5373_v46 = vpop.f32.mrb[1].mxu1 }
 0x196   :  { %v5375_v47 = vpop.f32.mrb[2].mxu1  ;;  %2913 = vmatpush1.bf16.msra.mxu1 %v4732_v40  ;;  %v4903_v40 = vld [vmem:[#allocation8 + $0x30] ss:$8 sps:$4 sm:$0xff]  }
 0x197   :  { %2741 = vmatpush1.bf16.msra.mxu0 %v4729_v39  ;;  %v5377_v50 = vpop.f32.mrb[3].mxu1  ;;  %2914 = vmatprep.subr.bf16.mxu1 %v4740_v42  ;;  %v4807_v39 = vld [vmem:[#allocation5 + $0x868] ss:$16 sps:$4 sm:$0xff]  }
 0x198   :  { %2742 = vmatprep.subr.bf16.mxu0 %v4737_v41  ;;  %v4908_v41 = vld [vmem:[#allocation8 + $0x44] ss:$8 sps:$4 sm:$0xff]  }
 0x199   :  { %v4810_v42 = vld [vmem:[#allocation5 + $0x888] ss:$16 sps:$4 sm:$0xff]  }
 0x19a   :  { %2915 = vmatpush1.bf16.msra.mxu1 %v4738_v45  ;;  %v4906_v45 = vld [vmem:[#allocation8 + $0x40] ss:$8 sps:$4 sm:$0xff]  }
 0x19b   :  { %2743 = vmatpush1.bf16.msra.mxu0 %v4735_v44  ;;  %2916 = vmatprep.subr.bf16.mxu1 %v4746_v49  ;;  %v4815_v44 = vld [vmem:[#allocation5 + $0x8ac] ss:$16 sps:$4 sm:$0xff]   ;;  %v4813_v49 = vld [vmem:[#allocation5 + $0x8a8] ss:$16 sps:$4 sm:$0xff]  }
 0x19c   :  { %2744 = vmatprep.subr.bf16.mxu0 %v4743_v48  ;;  %v4911_v48 = vld [vmem:[#allocation8 + $0x54] ss:$8 sps:$4 sm:$0xff]  }
 0x19e   :  { %2917 = vmatpush1.bf16.msra.mxu1 %v4744_v53  ;;  %v4909_v53 = vld [vmem:[#allocation8 + $0x50] ss:$8 sps:$4 sm:$0xff]  }
 0x19f   :  { %2745 = vmatpush1.bf16.msra.mxu0 %v4741_v52  ;;  %2918 = vmatprep.subr.bf16.mxu1 %v4752_v55  ;;  %v4818_v52 = vld [vmem:[#allocation5 + $0x8cc] ss:$16 sps:$4 sm:$0xff]   ;;  %v4816_v55 = vld [vmem:[#allocation5 + $0x8c8] ss:$16 sps:$4 sm:$0xff]  }
 0x1a0   :  { %2746 = vmatprep.subr.bf16.mxu0 %v4749_v54  ;;  %v4914_v54 = vld [vmem:[#allocation8 + $0x64] ss:$8 sps:$4 sm:$0xff]  }
 0x1a2   :  { %2919 = vmatpush1.bf16.msra.mxu1 %v4750_v57  ;;  %v4912_v57 = vld [vmem:[#allocation8 + $0x60] ss:$8 sps:$4 sm:$0xff]  }
 0x1a3   :  { %2747 = vmatpush1.bf16.msra.mxu0 %v4747_v56  ;;  %2920 = vmatprep.subr.bf16.mxu1 %v4758_v59  ;;  %v4821_v56 = vld [vmem:[#allocation5 + $0x8ec] ss:$16 sps:$4 sm:$0xff]   ;;  %v4819_v59 = vld [vmem:[#allocation5 + $0x8e8] ss:$16 sps:$4 sm:$0xff]  }
 0x1a4   :  { %2748 = vmatprep.subr.bf16.mxu0 %v4755_v58  ;;  %v4917_v58 = vld [vmem:[#allocation8 + $0x74] ss:$8 sps:$4 sm:$0xff]  }
 0x1a6   :  { %2921 = vmatpush1.bf16.msra.mxu1 %v4756_v61  ;;  %v4915_v61 = vld [vmem:[#allocation8 + $0x70] ss:$8 sps:$4 sm:$0xff]  }
 0x1a7   :  { %2749 = vmatpush1.bf16.msra.mxu0 %v4753_v60  ;;  %2922 = vmatprep.subr.bf16.mxu1 %v4764_v63  ;;  %v4824_v60 = vld [vmem:[#allocation5 + $0x90c] ss:$16 sps:$4 sm:$0xff]   ;;  %v4822_v63 = vld [vmem:[#allocation5 + $0x908] ss:$16 sps:$4 sm:$0xff]  }
 0x1a8   :  { %2750 = vmatprep.subr.bf16.mxu0 %v4761_v62  ;;  %v4920_v62 = vld [vmem:[#allocation8 + $0x84] ss:$8 sps:$4 sm:$0xff]  }
 0x1aa   :  { %2923 = vmatpush1.bf16.msra.mxu1 %v4762_v1  ;;  %v4918_v1 = vld [vmem:[#allocation8 + $0x80] ss:$8 sps:$4 sm:$0xff]  }
 0x1ab   :  { %2751 = vmatpush1.bf16.msra.mxu0 %v4759_v0  ;;  %2924 = vmatprep.subr.bf16.mxu1 %v4770_v3  ;;  %v4827_v0 = vld [vmem:[#allocation5 + $0x92c] ss:$16 sps:$4 sm:$0xff]   ;;  %v4825_v3 = vld [vmem:[#allocation5 + $0x928] ss:$16 sps:$4 sm:$0xff]  }
 0x1ac   :  { %2752 = vmatprep.subr.bf16.mxu0 %v4767_v2  ;;  %v4923_v2 = vld [vmem:[#allocation8 + $0x94] ss:$8 sps:$4 sm:$0xff]  }
 0x1ae   :  { %2925 = vmatpush1.bf16.msra.mxu1 %v4768_v7  ;;  %v4921_v7 = vld [vmem:[#allocation8 + $0x90] ss:$8 sps:$4 sm:$0xff]  }
 0x1af   :  { %2753 = vmatpush1.bf16.msra.mxu0 %v4765_v6  ;;  %2926 = vmatprep.subr.bf16.mxu1 %v4776_v9  ;;  %v4830_v6 = vld [vmem:[#allocation5 + $0x94c] ss:$16 sps:$4 sm:$0xff]   ;;  %v4828_v9 = vld [vmem:[#allocation5 + $0x948] ss:$16 sps:$4 sm:$0xff]  }
 0x1b0   :  { %2754 = vmatprep.subr.bf16.mxu0 %v4773_v8  ;;  %v4926_v8 = vld [vmem:[#allocation8 + $0xa4] ss:$8 sps:$4 sm:$0xff]  }
 0x1b2   :  { %2927 = vmatpush1.bf16.msra.mxu1 %v4774_v12  ;;  %v4924_v12 = vld [vmem:[#allocation8 + $0xa0] ss:$8 sps:$4 sm:$0xff]  }
 0x1b3   :  { %2755 = vmatpush1.bf16.msra.mxu0 %v4771_v11  ;;  %2928 = vmatprep.subr.bf16.mxu1 %v4782_v14  ;;  %v4833_v11 = vld [vmem:[#allocation5 + $0x96c] ss:$16 sps:$4 sm:$0xff]   ;;  %v4831_v14 = vld [vmem:[#allocation5 + $0x968] ss:$16 sps:$4 sm:$0xff]  }
 0x1b4   :  { %2756 = vmatprep.subr.bf16.mxu0 %v4779_v13  ;;  %v4929_v13 = vld [vmem:[#allocation8 + $0xb4] ss:$8 sps:$4 sm:$0xff]  }
 0x1b6   :  { %2929 = vmatpush1.bf16.msra.mxu1 %v4780_v17  ;;  %v4927_v17 = vld [vmem:[#allocation8 + $0xb0] ss:$8 sps:$4 sm:$0xff]  }
 0x1b7   :  { %2757 = vmatpush1.bf16.msra.mxu0 %v4777_v16  ;;  %2930 = vmatprep.subr.bf16.mxu1 %v4788_v20  ;;  %v4836_v16 = vld [vmem:[#allocation5 + $0x98c] ss:$16 sps:$4 sm:$0xff]   ;;  %v4834_v20 = vld [vmem:[#allocation5 + $0x988] ss:$16 sps:$4 sm:$0xff]  }
 0x1b8   :  { %2758 = vmatprep.subr.bf16.mxu0 %v4785_v18  ;;  %v4932_v18 = vld [vmem:[#allocation8 + $0xc4] ss:$8 sps:$4 sm:$0xff]  }
 0x1ba   :  { %2931 = vmatpush1.bf16.msra.mxu1 %v4786_v23  ;;  %v4930_v23 = vld [vmem:[#allocation8 + $0xc0] ss:$8 sps:$4 sm:$0xff]  }
 0x1bb   :  { %2759 = vmatpush1.bf16.msra.mxu0 %v4783_v4  ;;  %2932 = vmatprep.subr.bf16.mxu1 %v4794_v25  ;;  %v4839_v4 = vld [vmem:[#allocation5 + $0x9ac] ss:$16 sps:$4 sm:$0xff]   ;;  %v4837_v25 = vld [vmem:[#allocation5 + $0x9a8] ss:$16 sps:$4 sm:$0xff]  }
 0x1bc   :  { %2760 = vmatprep.subr.bf16.mxu0 %v4791_v24  ;;  %v4935_v24 = vld [vmem:[#allocation8 + $0xd4] ss:$8 sps:$4 sm:$0xff]  }
 0x1be   :  { %2933 = vmatpush1.bf16.msra.mxu1 %v4792_v5  ;;  %v4933_v5 = vld [vmem:[#allocation8 + $0xd0] ss:$8 sps:$4 sm:$0xff]  }
 0x1bf   :  { %2761 = vmatpush1.bf16.msra.mxu0 %v4789_v27  ;;  %2945 = vmatprep.subr.bf16.mxu1 %v4800_v51  ;;  %v4842_v27 = vld [vmem:[#allocation5 + $0x9cc] ss:$16 sps:$4 sm:$0xff]   ;;  %v4840_v51 = vld [vmem:[#allocation5 + $0x9c8] ss:$16 sps:$4 sm:$0xff]  }
 0x1c0   :  { %3439 = vmatprep.subr.bf16.mxu0 %v4896_v34  ;;  %v4846_v34 = vld [vmem:[#allocation5 + $0xa08] ss:$16 sps:$4 sm:$0xff]  }
 0x1c1   :  { %2935 = vmatmul.mubr.bf16.vlgmr.msra.gmra.mrb[4].mxu1 %v5355_v15  ;;  %v4900_v15 = vld [vmem:[#allocation8 + $0x20] ss:$8 sps:$4 sm:$0xff]  }
 0x1c2   :  { %2763 = vmatmul.mubr.bf16.vlgmr.msra.gmra.mrb[0].mxu0 %v5379_v28  ;;  %2946 = vmatpush1.bf16.msra.mxu1 %v4798_v29  ;;  %v4845_v29 = vld [vmem:[#allocation5 + $0x9ec] ss:$16 sps:$4 sm:$0xff]  }
 0x1c3   :  { %2977 = vmatprep.mubr.bf16.mxu1 %v5357_v21  ;;  %2947 = vmatprep.subr.bf16.mxu1 %v4803_v30  ;;  %v4812_v21 = vld [vmem:[#allocation5 + $0x88c] ss:$16 sps:$4 sm:$0xff]   ;;  %v4843_v30 = vld [vmem:[#allocation5 + $0x9e8] ss:$16 sps:$4 sm:$0xff]  }
 0x1c4   :  { %3440 = vmatpush1.bf16.msra.mxu0 %v4894_v31  ;;  %v4848_v31 = vld [vmem:[#allocation5 + $0xa0c] ss:$16 sps:$4 sm:$0xff]  }
 0x1c5   :  { %3441 = vmatprep.subr.bf16.mxu0 %v4899_v10  ;;  %v4849_v10 = vld [vmem:[#allocation5 + $0xa28] ss:$16 sps:$4 sm:$0xff]  }
 0x1c6   :  { %2948 = vmatpush1.bf16.msra.mxu1 %v4801_v32  ;;  %v4851_v32 = vld [vmem:[#allocation5 + $0xa2c] ss:$16 sps:$4 sm:$0xff]  }
 0x1c7   :  { %2949 = vmatprep.subr.bf16.mxu1 %v4806_v33  ;;  %v4854_v33 = vld [vmem:[#allocation5 + $0xa4c] ss:$16 sps:$4 sm:$0xff]  }
 0x1c8   :  { %3442 = vmatpush1.bf16.msra.mxu0 %v4897_v35  ;;  %v4852_v35 = vld [vmem:[#allocation5 + $0xa48] ss:$16 sps:$4 sm:$0xff]  }
 0x1c9   :  { %3443 = vmatprep.subr.bf16.mxu0 %v4902_v36  ;;  %v4857_v36 = vld [vmem:[#allocation5 + $0xa6c] ss:$16 sps:$4 sm:$0xff]  }
 0x1ca   :  { %2950 = vmatpush1.bf16.msra.mxu1 %v4804_v37  ;;  %v4855_v37 = vld [vmem:[#allocation5 + $0xa68] ss:$16 sps:$4 sm:$0xff]  }
 0x1cb   :  { %2951 = vmatprep.subr.bf16.mxu1 %v4809_v38  ;;  %v4860_v38 = vld [vmem:[#allocation5 + $0xa8c] ss:$16 sps:$4 sm:$0xff]  }
 0x1cc   :  { %3444 = vmatpush1.bf16.msra.mxu0 %v4900_v15  ;;  %v4858_v15 = vld [vmem:[#allocation5 + $0xa88] ss:$16 sps:$4 sm:$0xff]  }
 0x1cd   :  { %3445 = vmatprep.subr.bf16.mxu0 %v4905_v19  ;;  %v4863_v19 = vld [vmem:[#allocation5 + $0xaac] ss:$16 sps:$4 sm:$0xff]  }
 0x1ce   :  { %2952 = vmatpush1.bf16.msra.mxu1 %v4807_v39  ;;  %v4866_v39 = vld [vmem:[#allocation5 + $0xacc] ss:$16 sps:$4 sm:$0xff]  }
 0x1cf   :  { %2953 = vmatprep.subr.bf16.mxu1 %v4812_v21  ;;  %v4938_v21 = vld [vmem:[#allocation8 + $0xe4] ss:$8 sps:$4 sm:$0xff]  }
 0x1d0   :  { %3446 = vmatpush1.bf16.msra.mxu0 %v4903_v40  ;;  %v4936_v40 = vld [vmem:[#allocation8 + $0xe0] ss:$8 sps:$4 sm:$0xff]  }
 0x1d1   :  { %3447 = vmatprep.subr.bf16.mxu0 %v4908_v41  ;;  %v4869_v41 = vld [vmem:[#allocation5 + $0xaec] ss:$16 sps:$4 sm:$0xff]  }
 0x1d2   :  { %2954 = vmatpush1.bf16.msra.mxu1 %v4810_v42  ;;  %v4941_v42 = vld [vmem:[#allocation8 + $0xf4] ss:$8 sps:$4 sm:$0xff]  }
 0x1d3   :  { %2955 = vmatprep.subr.bf16.mxu1 %v4815_v44  ;;  %v4867_v44 = vld [vmem:[#allocation5 + $0xae8] ss:$16 sps:$4 sm:$0xff]  }
 0x1d4   :  { %3448 = vmatpush1.bf16.msra.mxu0 %v4906_v45  ;;  %v4939_v45 = vld [vmem:[#allocation8 + $0xf0] ss:$8 sps:$4 sm:$0xff]  }
 0x1d5   :  { %3449 = vmatprep.subr.bf16.mxu0 %v4911_v48  ;;  %v4872_v48 = vld [vmem:[#allocation5 + $0xb0c] ss:$16 sps:$4 sm:$0xff]  }
 0x1d6   :  { %2956 = vmatpush1.bf16.msra.mxu1 %v4813_v49  ;;  %v4870_v49 = vld [vmem:[#allocation5 + $0xb08] ss:$16 sps:$4 sm:$0xff]  }
 0x1d7   :  { %2957 = vmatprep.subr.bf16.mxu1 %v4818_v52  ;;  %v4875_v52 = vld [vmem:[#allocation5 + $0xb2c] ss:$16 sps:$4 sm:$0xff]  }
 0x1d8   :  { %3450 = vmatpush1.bf16.msra.mxu0 %v4909_v53  ;;  %v4944_v53 = vld [vmem:[#allocation8 + $0x104] ss:$8 sps:$4 sm:$0xff]  }
 0x1d9   :  { %3451 = vmatprep.subr.bf16.mxu0 %v4914_v54  ;;  %v4873_v54 = vld [vmem:[#allocation5 + $0xb28] ss:$16 sps:$4 sm:$0xff]  }
 0x1da   :  { %2958 = vmatpush1.bf16.msra.mxu1 %v4816_v55  ;;  %v4878_v55 = vld [vmem:[#allocation5 + $0xb4c] ss:$16 sps:$4 sm:$0xff]  }
 0x1db   :  { %2959 = vmatprep.subr.bf16.mxu1 %v4821_v56  ;;  %v4876_v56 = vld [vmem:[#allocation5 + $0xb48] ss:$16 sps:$4 sm:$0xff]  }
 0x1dc   :  { %3452 = vmatpush1.bf16.msra.mxu0 %v4912_v57  ;;  %v4881_v57 = vld [vmem:[#allocation5 + $0xb6c] ss:$16 sps:$4 sm:$0xff]  }
 0x1dd   :  { %3453 = vmatprep.subr.bf16.mxu0 %v4917_v58  ;;  %v4879_v58 = vld [vmem:[#allocation5 + $0xb68] ss:$16 sps:$4 sm:$0xff]  }
 0x1de   :  { %2960 = vmatpush1.bf16.msra.mxu1 %v4819_v59  ;;  %v4884_v59 = vld [vmem:[#allocation5 + $0xb8c] ss:$16 sps:$4 sm:$0xff]  }
 0x1df   :  { %2961 = vmatprep.subr.bf16.mxu1 %v4824_v60  ;;  %v4882_v60 = vld [vmem:[#allocation5 + $0xb88] ss:$16 sps:$4 sm:$0xff]  }
 0x1e0   :  { %3454 = vmatpush1.bf16.msra.mxu0 %v4915_v61  ;;  %v4887_v61 = vld [vmem:[#allocation5 + $0xbac] ss:$16 sps:$4 sm:$0xff]  }
 0x1e1   :  { %3455 = vmatprep.subr.bf16.mxu0 %v4920_v62  ;;  %v4885_v62 = vld [vmem:[#allocation5 + $0xba8] ss:$16 sps:$4 sm:$0xff]  }
 0x1e2   :  { %2962 = vmatpush1.bf16.msra.mxu1 %v4822_v63  ;;  %v4890_v63 = vld [vmem:[#allocation5 + $0xbcc] ss:$16 sps:$4 sm:$0xff]  }
 0x1e3   :  { %2963 = vmatprep.subr.bf16.mxu1 %v4827_v0  ;;  %v4888_v0 = vld [vmem:[#allocation5 + $0xbc8] ss:$16 sps:$4 sm:$0xff]  }
 0x1e4   :  { %3456 = vmatpush1.bf16.msra.mxu0 %v4918_v1  ;;  %v4893_v1 = vld [vmem:[#allocation5 + $0xbec] ss:$16 sps:$4 sm:$0xff]  }
 0x1e5   :  { %3457 = vmatprep.subr.bf16.mxu0 %v4923_v2  ;;  %v4891_v2 = vld [vmem:[#allocation5 + $0xbe8] ss:$16 sps:$4 sm:$0xff]  }
 0x1e6   :  { %2964 = vmatpush1.bf16.msra.mxu1 %v4825_v3  ;;  %v515_v3 = vlaneseq }
 0x1e7   :  { %2965 = vmatprep.subr.bf16.mxu1 %v4830_v6 }
 0x1e8   :  { %3458 = vmatpush1.bf16.msra.mxu0 %v4921_v7  ;;  %v5387_v6 = vshrl.u32 %v515_v3, 7  ;;  %v4984_v3 = vld [vmem:[#allocation8 + $0x1e0] ss:$8 sps:$4 sm:$0xff]  }
 0x1e9   :  { %3459 = vmatprep.subr.bf16.mxu0 %v4926_v8  ;;  %v5390_v8 = vld [vmem:[#allocation7] sm:$0xf] }
 0x1ea   :  { %2966 = vmatpush1.bf16.msra.mxu1 %v4828_v9  ;;  %v517_v7 = vsub.s32 0, %v5387_v6  ;;  %v521_v9 = vsub.s32 1, %v5387_v6 }
 0x1eb   :  { %2967 = vmatprep.subr.bf16.mxu1 %v4833_v11 }
 0x1ec   :  { %3460 = vmatpush1.bf16.msra.mxu0 %v4924_v12  ;;  %v518_v11 = vrot.slane %v5390_v8, %v517_v7  ;;  %v522_v12 = vrot.slane %v5390_v8, %v521_v9 }
 0x1ed   :  { %3461 = vmatprep.subr.bf16.mxu0 %v4929_v13 }
 0x1ee   :  { %2968 = vmatpush1.bf16.msra.mxu1 %v4831_v14  ;;  %v2550_v13 = vadd.f32 %v5371_v43, %v518_v11 }
 0x1ef   :  { %2969 = vmatprep.subr.bf16.mxu1 %v4836_v16  ;;  %v2554_v16 = vadd.f32 %v5375_v47, %v518_v11  ;;  %v4990_v47 = vld [vmem:[#allocation11 + $0x40] sm:$0xff]   ;;  %v4989_v11 = vld [vmem:[#allocation8 + $0x1f4] ss:$8 sps:$4 sm:$0xff]  }
 0x1f0   :  { %3462 = vmatpush1.bf16.msra.mxu0 %v4927_v17 }
 0x1f1   :  { %3463 = vmatprep.subr.bf16.mxu0 %v4932_v18 }
 0x1f2   :  { %2970 = vmatpush1.bf16.msra.mxu1 %v4834_v20  ;;  %v2556_v20 = vadd.f32 %v5377_v50, %v522_v12  ;;  %v4945_v50 = vld [vmem:[#allocation8 + $0x110] ss:$8 sps:$4 sm:$0xff]  }
 0x1f3   :  { %2971 = vmatprep.subr.bf16.mxu1 %v4839_v4 }
 0x1f4   :  { %3464 = vmatpush1.bf16.msra.mxu0 %v4930_v23 }
 0x1f5   :  { %3465 = vmatprep.subr.bf16.mxu0 %v4935_v24 }
 0x1f6   :  { %2972 = vmatpush1.bf16.msra.mxu1 %v4837_v25 }
 0x1f7   :  { %2973 = vmatprep.subr.bf16.mxu1 %v4842_v27 }
 0x1f8   :  { %3466 = vmatpush1.bf16.msra.mxu0 %v4933_v5 }
 0x1f9   :  { %3467 = vmatprep.subr.bf16.mxu0 %v4938_v21  ;;  %v4997_v21 = vld [vmem:[#allocation11 + $0x18] sm:$0xff]  }
 0x1fa   :  { %2974 = vmatpush1.bf16.msra.mxu1 %v4840_v51 }
 0x1fb   :  { %2975 = vmatprep.subr.bf16.mxu1 %v4845_v29 }
 0x1fc   :  { %3468 = vmatpush1.bf16.msra.mxu0 %v4936_v40  ;;  %v4954_v40 = vld [vmem:[#allocation8 + $0x140] ss:$8 sps:$4 sm:$0xff]  }
 0x1fd   :  { %3469 = vmatprep.subr.bf16.mxu0 %v4941_v42  ;;  %v4999_v42 = vld [vmem:[#allocation11 + $0x20] sm:$0xff]  }
 0x1fe   :  { %2976 = vmatpush1.bf16.msra.mxu1 %v4843_v30 }
 0x1ff   :  { %2988 = vmatprep.subr.bf16.mxu1 %v4848_v31 }
 0x200   :  { %3470 = vmatpush1.bf16.msra.mxu0 %v4939_v45  ;;  %v4957_v45 = vld [vmem:[#allocation8 + $0x150] ss:$8 sps:$4 sm:$0xff]  }
 0x201   :  { %2978 = vmatmul.mubr.bf16.vlgmr.msra.gmra.mrb[4].mxu1 %v5363_v22  ;;  %v4861_v22 = vld [vmem:[#allocation5 + $0xaa8] ss:$16 sps:$4 sm:$0xff]   ;;  %3482 = vmatprep.subr.bf16.mxu0 %v4944_v53  ;;  %v4963_v53 = vld [vmem:[#allocation8 + $0x170] ss:$8 sps:$4 sm:$0xff]  }
 0x202   :  { %2989 = vmatpush1.bf16.msra.mxu1 %v4846_v34  ;;  %3020 = vmatprep.mubr.bf16.mxu1 %v5365_v26  ;;  %v4864_v26 = vld [vmem:[#allocation5 + $0xac8] ss:$16 sps:$4 sm:$0xff]   ;;  %v4942_v34 = vld [vmem:[#allocation8 + $0x100] ss:$8 sps:$4 sm:$0xff]  }
 0x203   :  { %2990 = vmatprep.subr.bf16.mxu1 %v4851_v32  ;;  %v4991_v32 = vld [vmem:[#allocation11] sm:$0xff]  }
 0x206   :  { %2991 = vmatpush1.bf16.msra.mxu1 %v4849_v10  ;;  %v4992_v10 = vld [vmem:[#allocation11 + $0x48] sm:$0xff]  }
 0x207   :  { %2992 = vmatprep.subr.bf16.mxu1 %v4854_v33  ;;  %v4950_v33 = vld [vmem:[#allocation8 + $0x124] ss:$8 sps:$4 sm:$0xff]  }
 0x20a   :  { %2993 = vmatpush1.bf16.msra.mxu1 %v4852_v35  ;;  %v4993_v35 = vld [vmem:[#allocation11 + $0x8] sm:$0xff]  }
 0x20b   :  { %2994 = vmatprep.subr.bf16.mxu1 %v4857_v36  ;;  %v4994_v36 = vld [vmem:[#allocation11 + $0x50] sm:$0xff]  }
 0x20e   :  { %2995 = vmatpush1.bf16.msra.mxu1 %v4855_v37  ;;  %v4948_v37 = vld [vmem:[#allocation8 + $0x120] ss:$8 sps:$4 sm:$0xff]  }
 0x20f   :  { %2996 = vmatprep.subr.bf16.mxu1 %v4860_v38  ;;  %v4953_v38 = vld [vmem:[#allocation8 + $0x134] ss:$8 sps:$4 sm:$0xff]  }
 0x212   :  { %2997 = vmatpush1.bf16.msra.mxu1 %v4858_v15  ;;  %v4995_v15 = vld [vmem:[#allocation11 + $0x10] sm:$0xff]  }
 0x213   :  { %2998 = vmatprep.subr.bf16.mxu1 %v4863_v19  ;;  %v4996_v19 = vld [vmem:[#allocation11 + $0x58] sm:$0xff]  }
 0x216   :  { %2999 = vmatpush1.bf16.msra.mxu1 %v4861_v22  ;;  %v4951_v22 = vld [vmem:[#allocation8 + $0x130] ss:$8 sps:$4 sm:$0xff]  }
 0x217   :  { %3000 = vmatprep.subr.bf16.mxu1 %v4866_v39  ;;  %v4956_v39 = vld [vmem:[#allocation8 + $0x144] ss:$8 sps:$4 sm:$0xff]  }
 0x21a   :  { %3001 = vmatpush1.bf16.msra.mxu1 %v4864_v26  ;;  %v4998_v26 = vld [vmem:[#allocation11 + $0x60] sm:$0xff]  }
 0x21b   :  { %3002 = vmatprep.subr.bf16.mxu1 %v4869_v41  ;;  %v4959_v41 = vld [vmem:[#allocation8 + $0x154] ss:$8 sps:$4 sm:$0xff]  }
 0x21e   :  { %3003 = vmatpush1.bf16.msra.mxu1 %v4867_v44  ;;  %v5000_v44 = vld [vmem:[#allocation11 + $0x68] sm:$0xff]  }
 0x21f   :  { %3004 = vmatprep.subr.bf16.mxu1 %v4872_v48  ;;  %v4962_v48 = vld [vmem:[#allocation8 + $0x164] ss:$8 sps:$4 sm:$0xff]  }
 0x222   :  { %3005 = vmatpush1.bf16.msra.mxu1 %v4870_v49  ;;  %v4960_v49 = vld [vmem:[#allocation8 + $0x160] ss:$8 sps:$4 sm:$0xff]  }
 0x223   :  { %3006 = vmatprep.subr.bf16.mxu1 %v4875_v52  ;;  %v4965_v52 = vld [vmem:[#allocation8 + $0x174] ss:$8 sps:$4 sm:$0xff]  }
 0x226   :  { %3007 = vmatpush1.bf16.msra.mxu1 %v4873_v54  ;;  %v4968_v54 = vld [vmem:[#allocation8 + $0x184] ss:$8 sps:$4 sm:$0xff]  }
 0x227   :  { %3008 = vmatprep.subr.bf16.mxu1 %v4878_v55  ;;  %v4966_v55 = vld [vmem:[#allocation8 + $0x180] ss:$8 sps:$4 sm:$0xff]  }
 0x22a   :  { %3009 = vmatpush1.bf16.msra.mxu1 %v4876_v56  ;;  %v4971_v56 = vld [vmem:[#allocation8 + $0x194] ss:$8 sps:$4 sm:$0xff]  }
 0x22b   :  { %3010 = vmatprep.subr.bf16.mxu1 %v4881_v57  ;;  %v4969_v57 = vld [vmem:[#allocation8 + $0x190] ss:$8 sps:$4 sm:$0xff]  }
 0x22e   :  { %3011 = vmatpush1.bf16.msra.mxu1 %v4879_v58  ;;  %v4974_v58 = vld [vmem:[#allocation8 + $0x1a4] ss:$8 sps:$4 sm:$0xff]  }
 0x22f   :  { %3012 = vmatprep.subr.bf16.mxu1 %v4884_v59  ;;  %v4972_v59 = vld [vmem:[#allocation8 + $0x1a0] ss:$8 sps:$4 sm:$0xff]  }
 0x232   :  { %3013 = vmatpush1.bf16.msra.mxu1 %v4882_v60  ;;  %v4977_v60 = vld [vmem:[#allocation8 + $0x1b4] ss:$8 sps:$4 sm:$0xff]  }
 0x233   :  { %3014 = vmatprep.subr.bf16.mxu1 %v4887_v61  ;;  %v4975_v61 = vld [vmem:[#allocation8 + $0x1b0] ss:$8 sps:$4 sm:$0xff]  }
 0x236   :  { %3015 = vmatpush1.bf16.msra.mxu1 %v4885_v62  ;;  %v4980_v62 = vld [vmem:[#allocation8 + $0x1c4] ss:$8 sps:$4 sm:$0xff]  }
 0x237   :  { %3016 = vmatprep.subr.bf16.mxu1 %v4890_v63  ;;  %v4978_v63 = vld [vmem:[#allocation8 + $0x1c0] ss:$8 sps:$4 sm:$0xff]  }
 0x23a   :  { %3017 = vmatpush1.bf16.msra.mxu1 %v4888_v0  ;;  %v4983_v0 = vld [vmem:[#allocation8 + $0x1d4] ss:$8 sps:$4 sm:$0xff]  }
 0x23b   :  { %3018 = vmatprep.subr.bf16.mxu1 %v4893_v1  ;;  %v4981_v1 = vld [vmem:[#allocation8 + $0x1d0] ss:$8 sps:$4 sm:$0xff]  }
 0x23e   :  { %3019 = vmatpush1.bf16.msra.mxu1 %v4891_v2  ;;  %v4986_v2 = vld [vmem:[#allocation8 + $0x1e4] ss:$8 sps:$4 sm:$0xff]  }
 0x23f   :  { %4206 = vmatprep.subr.bf16.mxu1 %v4990_v47  ;;  %v5004_v47 = vld [vmem:[#allocation11 + $0x78] sm:$0xff]  }
 0x241   :  { %3021 = vmatmul.mubr.bf16.vlgmr.msra.gmra.mrb[4].mxu1 %v5379_v28  ;;  %v2552_v28 = vadd.f32 %v5373_v46, %v522_v12  ;;  %v4947_v46 = vld [vmem:[#allocation8 + $0x114] ss:$8 sps:$4 sm:$0xff]   ;;  %v4987_v12 = vld [vmem:[#allocation8 + $0x1f0] ss:$8 sps:$4 sm:$0xff]  }
 0x242   :  { %4207 = vmatpush3.bf16.msra.mxu1 %v4991_v32  ;;  %v5005_v32 = vld [vmem:[#allocation11 + $0x38] sm:$0xff]  }
 0x243   :  { %4208 = vmatprep.subr.bf16.mxu1 %v4992_v10  ;;  %v3107_v10 = vld [vmem:[#allocation10] sm:$0x3] }
 0x246   :  { %4209 = vmatpush3.bf16.msra.mxu1 %v4993_v35 }
 0x247   :  { %4210 = vmatprep.subr.bf16.mxu1 %v4994_v36 }
 0x24a   :  { %4211 = vmatpush3.bf16.msra.mxu1 %v4995_v15 }
 0x24b   :  { %4212 = vmatprep.subr.bf16.mxu1 %v4996_v19 }
 0x24e   :  { %4213 = vmatpush3.bf16.msra.mxu1 %v4997_v21 }
 0x24f   :  { %4214 = vmatprep.subr.bf16.mxu1 %v4998_v26 }
 0x252   :  { %4215 = vmatpush3.bf16.msra.mxu1 %v4999_v42 }
 0x253   :  { %4216 = vmatprep.subr.bf16.mxu1 %v5000_v44 }
 0x295   :  { %v2764_v14 = vpop.f32.mrb[0].mxu0 }
 0x296   :  { %v4229_v17 = vadd.f32 %v2764_v14, %v2550_v13  ;;  %v2766_v18 = vpop.f32.mrb[1].mxu0  ;;  %v525_v13 = vsub.s32 2, %v5387_v6 }
 0x297   :  { %v4231_v4 = vadd.f32 %v2766_v18, %v2552_v28  ;;  %v2768_v23 = vpop.f32.mrb[2].mxu0  ;;  %v529_v28 = vsub.s32 3, %v5387_v6 }
 0x298   :  { %v4233_v24 = vadd.f32 %v2768_v23, %v2554_v16  ;;  %v2770_v25 = vpop.f32.mrb[3].mxu0  ;;  %v3031_v5 = vmax.f32 %v4229_v17, 0.0  ;;  %v526_v14 = vrot.slane %v5390_v8, %v525_v13 }
 0x299   :  { %v4235_v27 = vadd.f32 %v2770_v25, %v2556_v20  ;;  %v3032_v29 = vmax.f32 %v4231_v4, 0.0  ;;  %v530_v16 = vrot.slane %v5390_v8, %v529_v28  ;;  %v5003_v8 = vld [vmem:[#allocation11 + $0x30] sm:$0xff]  }
 0x29a   :  { %v3035_v51 = vmax.f32 %v4233_v24, 0.0 }
 0x29b   :  { %v3036_v30 = vmax.f32 %v4235_v27, 0.0 }
 0x29c   :  { %v3039_v31 = vpack.c.bf16 %v3035_v51, %v3031_v5 }
 0x29d   :  { %v3040_v43 = vpack.c.bf16 %v3036_v30, %v3032_v29 }
 0x29f   :  { %3471 = vmatprep.mubr.bf16.mxu0 %v3040_v43 }
 0x2a0   :  { %3472 = vmatmul.mubr.bf16.vlgmr.msra.gmra.mrb[4].mxu0 %v3039_v31 }
 0x2a1   :  { %3483 = vmatpush1.bf16.msra.mxu0 %v4942_v34  ;;  %v5001_v34 = vld [vmem:[#allocation11 + $0x28] sm:$0xff]  }
 0x2a2   :  { %3484 = vmatprep.subr.bf16.mxu0 %v4947_v46  ;;  %4217 = vmatpush3.bf16.msra.mxu1 %v5001_v34  ;;  %v5002_v46 = vld [vmem:[#allocation11 + $0x70] sm:$0xff]  }
 0x2a3   :  { %4218 = vmatprep.subr.bf16.mxu1 %v5002_v46 }
 0x2a5   :  { %3485 = vmatpush1.bf16.msra.mxu0 %v4945_v50  ;;  %v3112_v50 = vrot.slane %v3107_v10, %v517_v7 }
 0x2a6   :  { %3486 = vmatprep.subr.bf16.mxu0 %v4950_v33  ;;  %4219 = vmatpush3.bf16.msra.mxu1 %v5003_v8  ;;  %v3116_v33 = vrot.slane %v3107_v10, %v521_v9 }
 0x2a7   :  { %4220 = vmatprep.subr.bf16.mxu1 %v5004_v47 }
 0x2a9   :  { %3487 = vmatpush1.bf16.msra.mxu0 %v4948_v37 }
 0x2aa   :  { %3488 = vmatprep.subr.bf16.mxu0 %v4953_v38  ;;  %4221 = vmatpush3.bf16.msra.mxu1 %v5005_v32 }
 0x2ad   :  { %3489 = vmatpush1.bf16.msra.mxu0 %v4951_v22 }
 0x2ae   :  { %3490 = vmatprep.subr.bf16.mxu0 %v4956_v39 }
 0x2b1   :  { %3491 = vmatpush1.bf16.msra.mxu0 %v4954_v40 }
 0x2b2   :  { %3492 = vmatprep.subr.bf16.mxu0 %v4959_v41 }
 0x2b5   :  { %3493 = vmatpush1.bf16.msra.mxu0 %v4957_v45  ;;  %v4189_v45 = vld [vmem:[#allocation13] ss:$0 sm:$0xff] }
 0x2b6   :  { %3494 = vmatprep.subr.bf16.mxu0 %v4962_v48 }
 0x2b9   :  { %3495 = vmatpush1.bf16.msra.mxu0 %v4960_v49 }
 0x2ba   :  { %3496 = vmatprep.subr.bf16.mxu0 %v4965_v52 }
 0x2bd   :  { %3497 = vmatpush1.bf16.msra.mxu0 %v4963_v53 }
 0x2be   :  { %3498 = vmatprep.subr.bf16.mxu0 %v4968_v54 }
 0x2c1   :  { %3499 = vmatpush1.bf16.msra.mxu0 %v4966_v55 }
 0x2c2   :  { %3500 = vmatprep.subr.bf16.mxu0 %v4971_v56 }
 0x2c5   :  { %3501 = vmatpush1.bf16.msra.mxu0 %v4969_v57 }
 0x2c6   :  { %3502 = vmatprep.subr.bf16.mxu0 %v4974_v58 }
 0x2c9   :  { %3503 = vmatpush1.bf16.msra.mxu0 %v4972_v59 }
 0x2ca   :  { %3504 = vmatprep.subr.bf16.mxu0 %v4977_v60 }
 0x2cd   :  { %3505 = vmatpush1.bf16.msra.mxu0 %v4975_v61 }
 0x2ce   :  { %3506 = vmatprep.subr.bf16.mxu0 %v4980_v62 }
 0x2d1   :  { %3507 = vmatpush1.bf16.msra.mxu0 %v4978_v63 }
 0x2d2   :  { %3508 = vmatprep.subr.bf16.mxu0 %v4983_v0 }
 0x2d5   :  { %3509 = vmatpush1.bf16.msra.mxu0 %v4981_v1 }
 0x2d6   :  { %3510 = vmatprep.subr.bf16.mxu0 %v4986_v2 }
 0x2d9   :  { %3511 = vmatpush1.bf16.msra.mxu0 %v4984_v3 }
 0x2da   :  { %3512 = vmatprep.subr.bf16.mxu0 %v4989_v11 }
 0x2dd   :  { %3513 = vmatpush1.bf16.msra.mxu0 %v4987_v12 }
 0x314   :  { %v3022_v17 = vpop.f32.mrb[4].mxu1 }
 0x315   :  { %v4236_v18 = vadd.f32 %v3022_v17, %v526_v14  ;;  %v3024_v20 = vpop.f32.mrb[5].mxu1 }
 0x316   :  { %v4237_v4 = vadd.f32 %v3024_v20, %v530_v16  ;;  %v3026_v23 = vpop.f32.mrb[6].mxu1 }
 0x317   :  { %v4238_v24 = vadd.f32 %v3026_v23, %v526_v14  ;;  %v3028_v25 = vpop.f32.mrb[7].mxu1  ;;  %v3033_v5 = vmax.f32 %v4236_v18, 0.0 }
 0x318   :  { %v4239_v27 = vadd.f32 %v3028_v25, %v530_v16  ;;  %v3034_v29 = vmax.f32 %v4237_v4, 0.0 }
 0x319   :  { %v3037_v51 = vmax.f32 %v4238_v24, 0.0 }
 0x31a   :  { %v3038_v30 = vmax.f32 %v4239_v27, 0.0 }
 0x31b   :  { %v3041_v31 = vpack.c.bf16 %v3037_v51, %v3033_v5 }
 0x31c   :  { %v3042_v43 = vpack.c.bf16 %v3038_v30, %v3034_v29 }
 0x31e   :  { %3514 = vmatprep.mubr.bf16.mxu0 %v3042_v43 }
 0x31f   :  { %3515 = vmatmul.mubr.bf16.vlgmr.msra.gmra.mrb[4].mxu0 %v3041_v31 }
 0x3f2   :  { %v3516_v35 = vpop.f32.mrb[4].mxu0 }
 0x3f3   :  { %v4240_v36 = vadd.f32 %v3516_v35, %v3112_v50  ;;  %v3518_v37 = vpop.f32.mrb[5].mxu0 }
 0x3f4   :  { %v4241_v38 = vadd.f32 %v3518_v37, %v3116_v33  ;;  %v3520_v15 = vpop.f32.mrb[6].mxu0 }
 0x3f5   :  { %v4242_v19 = vadd.f32 %v3520_v15, %v3112_v50  ;;  %v3522_v22 = vpop.f32.mrb[7].mxu0  ;;  %v3525_v21 = vmax.f32 %v4240_v36, 0.0 }
 0x3f6   :  { %v4243_v39 = vadd.f32 %v3522_v22, %v3116_v33  ;;  %v3526_v40 = vmax.f32 %v4241_v38, 0.0 }
 0x3f7   :  { %v3527_v26 = vmax.f32 %v4242_v19, 0.0 }
 0x3f8   :  { %v3528_v41 = vmax.f32 %v4243_v39, 0.0 }
 0x3f9   :  { %v3529_v42 = vpack.c.bf16 %v3527_v26, %v3525_v21 }
 0x3fa   :  { %v3530_v44 = vpack.c.bf16 %v3528_v41, %v3526_v40 }
 0x3fc   :  { %3698 = vmatprep.mubr.bf16.mxu1 %v3530_v44 }
 0x3fd   :  { %3699 = vmatmul.mubr.bf16.vlgmr.msra.gmra.mrb[8].mxu1 %v3529_v42 }
 0x4d0   :  { %v4222_v7 = vpop.f32.mrb[8].mxu1 }
 0x4d1   :  { %v4223_v6 = vpop.f32.mrb[9].mxu1 }
 0x4d2   :  { %v4224_v9 = vadd.f32 %v4223_v6, %v4222_v7  ;;  %v4225_v48 = vpop.f32.mrb[10].mxu1 }
 0x4d3   :  { %v4226_v49 = vpop.f32.mrb[11].mxu1 }
 0x4d4   :  { %v3701_v52 = vadd.f32 %v4224_v9, %v4189_v45  ;;  %v4227_v53 = vadd.f32 %v4226_v49, %v4225_v48 }
 0x4d6   :  { %3707 = vst [vmem:[#allocation14] sm:$0xff] %v3701_v52  ;;  %v3704_v54 = vadd.f32 %v4227_v53, %v4189_v45 }
 0x4d8   :  { %3708 = vst [vmem:[#allocation14 + $0x8] sm:$0xff] %v3704_v54 }
 0x4d9   :  { %5171 = shalt.err (!%p5168_p4)
}
 0x4da   :  { %s5172_s21 = scalar_lea.hbm %s5433_s7, 256 }
 0x4db   :  { %p5173_p5 = scmp.ne.s32.totalorder %s5433_s7, %s5172_s21  ;;  %p5176_p6 = scmp.lt.u32.totalorder %s5172_s21, %s5433_s7 }
 0x4dd   :  { %p5178_p7 = pnand %p5176_p6, %p5173_p5 }
 0x4df   :  { %5181 = shalt.err (!%p5178_p7)
}
 0x4e0   :  { %3720 = dma.vmem_to_hbm [thread:$0]  %s3715_s18, 256, %s5433_s7, [#allocation4], %s5196_s1, %s5196_s1, %s5197_s25  }
 0x4e1   :  { %5190 = dma.done.wait [#allocation4], 256  }
 0x4e2   :  { %5191 = vsyncadd [#allocation4], 4294967040 }
 0x4e3   :  { %3724 = vsyncpa [#allocation3], 1 }
 0x4e4   :  { %3725 = vsyncpa [#allocation6], 1 }
 0x4e5   :  { %3726 = vsyncpa [#allocation9], 1 }
 0x4e6   :  { %3727 = vsyncpa [#allocation12], 1 }
 0x4e7   :  { %3728 = vsyncpa [#allocation4], 1 }

</bundles_post_ra>
